<compile_context>
chip_gen: v7x
topology: tpu7x:2x2x1
jax: 0.10.0
libtpu: 0.0.40
codegen_flags: <defaults>
</compile_context>

<pallas_src>
import functools
import math

import jax
import jax.numpy as jnp
from jax.experimental import pallas as pl
from jax.experimental.pallas import tpu as pltpu

MASK_TOKEN_ID = 103


# ----------------------------------------------------------------------------
# small helpers
# ----------------------------------------------------------------------------
def _row_tile(M, target=256):
    """Largest row tile <= target that divides M (multiple of 8), else M."""
    if M <= target:
        return M
    t = (target // 8) * 8
    while t >= 8:
        if M % t == 0:
            return t
        t -= 8
    return M


def _gelu(y):
    # tanh-approximation GELU (f32 math).
    return 0.5 * y * (1.0 + jnp.tanh(0.7978845608028654 * (y + 0.044715 * y * y * y)))


def _layernorm_f32(y, g, b, eps):
    mu = jnp.mean(y, axis=-1, keepdims=True)
    var = jnp.mean(jnp.square(y - mu), axis=-1, keepdims=True)
    return (y - mu) * jax.lax.rsqrt(var + eps) * g + b


# ----------------------------------------------------------------------------
# Pallas kernels
# ----------------------------------------------------------------------------
def _dense_kernel(x_ref, w_ref, b_ref, o_ref):
    # bf16 x bf16 -> f32 accumulate on the MXU.
    y = jnp.dot(x_ref[...], w_ref[...], preferred_element_type=jnp.float32)
    y = y + b_ref[...]
    o_ref[...] = y.astype(o_ref.dtype)


def dense(x, w, b, tm=256):
    """x: [M, K] (bf16), w: [K, N] (bf16), b: [N] (f32) -> [M, N] (x.dtype)."""
    M, K = x.shape
    _, N = w.shape
    tm = _row_tile(M, tm)
    return pl.pallas_call(
        _dense_kernel,
        grid=(M // tm,),
        in_specs=[
            pl.BlockSpec((tm, K), lambda i: (i, 0)),
            pl.BlockSpec((K, N), lambda i: (0, 0)),   # weight resident across steps
            pl.BlockSpec((1, N), lambda i: (0, 0)),
        ],
        out_specs=pl.BlockSpec((tm, N), lambda i: (i, 0)),
        out_shape=jax.ShapeDtypeStruct((M, N), x.dtype),
        compiler_params=pltpu.CompilerParams(dimension_semantics=("parallel",)),
    )(x, w, b.reshape(1, N))


def _ln_kernel(x_ref, g_ref, b_ref, o_ref, *, eps):
    x = x_ref[...].astype(jnp.float32)
    o_ref[...] = _layernorm_f32(x, g_ref[...], b_ref[...], eps).astype(o_ref.dtype)


def layernorm(x, gamma, beta, eps=1e-12, out_dtype=None, tm=256):
    """LayerNorm(x) over the last dim. x: [M, H]."""
    M, H = x.shape
    tm = _row_tile(M, tm)
    out_dtype = out_dtype or x.dtype
    return pl.pallas_call(
        functools.partial(_ln_kernel, eps=eps),
        grid=(M // tm,),
        in_specs=[
            pl.BlockSpec((tm, H), lambda i: (i, 0)),
            pl.BlockSpec((1, H), lambda i: (0, 0)),
            pl.BlockSpec((1, H), lambda i: (0, 0)),
        ],
        out_specs=pl.BlockSpec((tm, H), lambda i: (i, 0)),
        out_shape=jax.ShapeDtypeStruct((M, H), out_dtype),
        compiler_params=pltpu.CompilerParams(dimension_semantics=("parallel",)),
    )(x, gamma.reshape(1, H), beta.reshape(1, H))


def _dense_add_ln_kernel(x_ref, w_ref, b_ref, r_ref, g_ref, bt_ref, o_ref, *, eps):
    y = jnp.dot(x_ref[...], w_ref[...], preferred_element_type=jnp.float32)
    y = y + b_ref[...] + r_ref[...].astype(jnp.float32)
    o_ref[...] = _layernorm_f32(y, g_ref[...], bt_ref[...], eps).astype(o_ref.dtype)


def dense_add_ln(x, w, b, residual, gamma, beta, eps=1e-12, tm=256):
    """LayerNorm(x @ w + b + residual). Fused attn-output projection."""
    M, K = x.shape
    _, N = w.shape
    tm = _row_tile(M, tm)
    return pl.pallas_call(
        functools.partial(_dense_add_ln_kernel, eps=eps),
        grid=(M // tm,),
        in_specs=[
            pl.BlockSpec((tm, K), lambda i: (i, 0)),
            pl.BlockSpec((K, N), lambda i: (0, 0)),
            pl.BlockSpec((1, N), lambda i: (0, 0)),
            pl.BlockSpec((tm, N), lambda i: (i, 0)),
            pl.BlockSpec((1, N), lambda i: (0, 0)),
            pl.BlockSpec((1, N), lambda i: (0, 0)),
        ],
        out_specs=pl.BlockSpec((tm, N), lambda i: (i, 0)),
        out_shape=jax.ShapeDtypeStruct((M, N), x.dtype),
        compiler_params=pltpu.CompilerParams(dimension_semantics=("parallel",)),
    )(x, w, b.reshape(1, N), residual, gamma.reshape(1, N), beta.reshape(1, N))


def _ffn_kernel(x_ref, wi_ref, bi_ref, wo_ref, bo_ref, g_ref, bt_ref, o_ref, *, eps):
    x = x_ref[...]
    h = jnp.dot(x, wi_ref[...], preferred_element_type=jnp.float32) + bi_ref[...]
    h = _gelu(h)
    y = jnp.dot(h.astype(x.dtype), wo_ref[...], preferred_element_type=jnp.float32)
    y = y + bo_ref[...] + x.astype(jnp.float32)
    o_ref[...] = _layernorm_f32(y, g_ref[...], bt_ref[...], eps).astype(o_ref.dtype)


def ffn_fused(x, wi, bi, wo, bo, gamma, beta, eps=1e-12, tm=256):
    """LayerNorm(gelu(x @ wi + bi) @ wo + bo + x): whole FFN block in one kernel."""
    M, H = x.shape
    _, I = wi.shape
    tm = _row_tile(M, tm)
    return pl.pallas_call(
        functools.partial(_ffn_kernel, eps=eps),
        grid=(M // tm,),
        in_specs=[
            pl.BlockSpec((tm, H), lambda i: (i, 0)),
            pl.BlockSpec((H, I), lambda i: (0, 0)),
            pl.BlockSpec((1, I), lambda i: (0, 0)),
            pl.BlockSpec((I, H), lambda i: (0, 0)),
            pl.BlockSpec((1, H), lambda i: (0, 0)),
            pl.BlockSpec((1, H), lambda i: (0, 0)),
            pl.BlockSpec((1, H), lambda i: (0, 0)),
        ],
        out_specs=pl.BlockSpec((tm, H), lambda i: (i, 0)),
        out_shape=jax.ShapeDtypeStruct((M, H), x.dtype),
        compiler_params=pltpu.CompilerParams(dimension_semantics=("parallel",)),
    )(x, wi, bi.reshape(1, I), wo, bo.reshape(1, H),
      gamma.reshape(1, H), beta.reshape(1, H))


def _attention_kernel(q_ref, k_ref, v_ref, m_ref, o_ref):
    # q/k/v refs: (S, Dh) bf16; m ref: (1, S) f32 additive mask.
    # 1/sqrt(Dh) scale is pre-folded into the Q projection weights.
    s = jax.lax.dot_general(q_ref[...], k_ref[...], (((1,), (1,)), ((), ())),
                            preferred_element_type=jnp.float32)
    s = s + m_ref[...].astype(jnp.float32)
    s = s - jnp.max(s, axis=-1, keepdims=True)
    p = jnp.exp(s)
    denom = jnp.sum(p, axis=-1, keepdims=True)
    p = p * pl.reciprocal(denom, approx=True)
    o_ref[...] = jnp.dot(p.astype(v_ref.dtype), v_ref[...],
                         preferred_element_type=jnp.float32).astype(o_ref.dtype)


def attention(q, k, v, add_mask):
    """q/k/v: [B, nH, S, Dh]; add_mask: [B, 1, 1, S] additive (0 / -1e9) f32."""
    B, nH, S, Dh = q.shape
    qkv_spec = pl.BlockSpec((None, None, S, Dh), lambda b, h: (b, h, 0, 0))
    mask_spec = pl.BlockSpec((None, None, 1, S), lambda b, h: (b, 0, 0, 0))
    return pl.pallas_call(
        _attention_kernel,
        grid=(B, nH),
        in_specs=[qkv_spec, qkv_spec, qkv_spec, mask_spec],
        out_specs=pl.BlockSpec((None, None, S, Dh), lambda b, h: (b, h, 0, 0)),
        out_shape=jax.ShapeDtypeStruct((B, nH, S, Dh), q.dtype),
        compiler_params=pltpu.CompilerParams(
            dimension_semantics=("parallel", "parallel")),
    )(q, k, v, add_mask)


def _mlm_head_kernel(x_ref, w_ref, b_ref, g_ref, bt_ref, dw_ref, db_ref, o_ref, *, eps):
    t = jnp.dot(x_ref[...], w_ref[...], preferred_element_type=jnp.float32) + b_ref[...]
    t = _gelu(t)
    t = _layernorm_f32(t, g_ref[...], bt_ref[...], eps)
    logits = jnp.dot(t.astype(dw_ref.dtype), dw_ref[...],
                     preferred_element_type=jnp.float32) + db_ref[...]
    o_ref[...] = logits.astype(o_ref.dtype)


def mlm_head(mask_hidden, w, b, gamma, beta, dec_w, dec_b, eps=1e-12):
    """Fused MLM head on the gathered [MASK] rows only: dense+GELU+LN+decoder.

    mask_hidden: [B, H]; dec_w: [H, rels_num] (pre-sliced tied decoder weight).
    """
    B, H = mask_hidden.shape
    R = dec_w.shape[1]
    return pl.pallas_call(
        functools.partial(_mlm_head_kernel, eps=eps),
        grid=(1,),
        in_specs=[
            pl.BlockSpec((B, H), lambda i: (0, 0)),
            pl.BlockSpec((H, H), lambda i: (0, 0)),
            pl.BlockSpec((1, H), lambda i: (0, 0)),
            pl.BlockSpec((1, H), lambda i: (0, 0)),
            pl.BlockSpec((1, H), lambda i: (0, 0)),
            pl.BlockSpec((H, R), lambda i: (0, 0)),
            pl.BlockSpec((1, R), lambda i: (0, 0)),
        ],
        out_specs=pl.BlockSpec((B, R), lambda i: (0, 0)),
        out_shape=jax.ShapeDtypeStruct((B, R), jnp.float32),
    )(mask_hidden, w, b.reshape(1, H), gamma.reshape(1, H), beta.reshape(1, H),
      dec_w, dec_b.reshape(1, R))


# ----------------------------------------------------------------------------
# Parameter init (deterministic, synthetic — no checkpoint load)
# ----------------------------------------------------------------------------
def init_params(key, cfg):
    H, I, V = cfg["hidden"], cfg["intermediate"], cfg["vocab"]
    keys = iter(jax.random.split(key, 64))

    def w(shape):
        return (0.02 * jax.random.normal(next(keys), shape)).astype(jnp.float32)

    params = dict(
        word_emb=w((V, H)),
        pos_emb=w((cfg["max_pos"], H)),
        type_emb=w((cfg["type_vocab"], H)),
        emb_ln_g=jnp.ones((H,), jnp.float32),
        emb_ln_b=jnp.zeros((H,), jnp.float32),
        layers=[],
        mlm_dense_w=w((H, H)),
        mlm_dense_b=jnp.zeros((H,), jnp.float32),
        mlm_ln_g=jnp.ones((H,), jnp.float32),
        mlm_ln_b=jnp.zeros((H,), jnp.float32),
        decoder_bias=jnp.zeros((V,), jnp.float32),  # decoder weight tied to word_emb
    )
    for _ in range(cfg["layers"]):
        params["layers"].append(dict(
            wq=w((H, H)), bq=jnp.zeros((H,), jnp.float32),
            wk=w((H, H)), bk=jnp.zeros((H,), jnp.float32),
            wv=w((H, H)), bv=jnp.zeros((H,), jnp.float32),
            wo=w((H, H)), bo=jnp.zeros((H,), jnp.float32),
            ln1_g=jnp.ones((H,), jnp.float32), ln1_b=jnp.zeros((H,), jnp.float32),
            wi=w((H, I)), bi=jnp.zeros((I,), jnp.float32),
            wo2=w((I, H)), bo2=jnp.zeros((H,), jnp.float32),
            ln2_g=jnp.ones((H,), jnp.float32), ln2_b=jnp.zeros((H,), jnp.float32),
        ))
    return params


def prepare_params(params, cfg, rels_num, dtype=jnp.bfloat16):
    """One-time weight prep: bf16 cast, fused+scaled QKV, pre-sliced decoder."""
    H = cfg["hidden"]
    nH = cfg["heads"]
    Dh = H // nH
    scale = 1.0 / math.sqrt(Dh)

    prepped = dict(
        word_emb=params["word_emb"].astype(dtype),
        pos_emb=params["pos_emb"].astype(dtype),
        type_emb=params["type_emb"].astype(dtype),
        emb_ln_g=params["emb_ln_g"], emb_ln_b=params["emb_ln_b"],
        mlm_dense_w=params["mlm_dense_w"].astype(dtype),
        mlm_dense_b=params["mlm_dense_b"],
        mlm_ln_g=params["mlm_ln_g"], mlm_ln_b=params["mlm_ln_b"],
        # tied decoder: only the last rels_num vocab rows are ever needed.
        dec_w=params["word_emb"][-rels_num:].T.astype(dtype),       # (H, rels_num)
        dec_b=params["decoder_bias"][-rels_num:],                   # (rels_num,)
        layers=[],
    )
    for lp in params["layers"]:
        # fold 1/sqrt(Dh) into the Q projection; fuse Q/K/V into one [H, 3H] weight.
        wqkv = jnp.concatenate([lp["wq"] * scale, lp["wk"], lp["wv"]], axis=1)
        bqkv = jnp.concatenate([lp["bq"] * scale, lp["bk"], lp["bv"]])
        prepped["layers"].append(dict(
            wqkv=wqkv.astype(dtype), bqkv=bqkv,
            wo=lp["wo"].astype(dtype), bo=lp["bo"],
            ln1_g=lp["ln1_g"], ln1_b=lp["ln1_b"],
            wi=lp["wi"].astype(dtype), bi=lp["bi"],
            wo2=lp["wo2"].astype(dtype), bo2=lp["bo2"],
            ln2_g=lp["ln2_g"], ln2_b=lp["ln2_b"],
        ))
    return prepped


# ----------------------------------------------------------------------------
# Forward pass (mirrors Bert_Encoder.forward)
# ----------------------------------------------------------------------------
def bert_encoder_forward(prepped, cfg, input_ids, attention_mask, token_type_ids,
                         rels_num, return_mask_hidden=False, return_cls_hidden=False):
    B, S = input_ids.shape
    H = cfg["hidden"]
    nH = cfg["heads"]
    Dh = H // nH
    cdtype = prepped["word_emb"].dtype

    # --- embeddings + LayerNorm (no zeros residual tensor) ----------------------
    word = jnp.take(prepped["word_emb"], input_ids, axis=0).astype(jnp.float32)
    pos = prepped["pos_emb"][:S][None, :, :].astype(jnp.float32)
    typ = jnp.take(prepped["type_emb"], token_type_ids, axis=0).astype(jnp.float32)
    emb = (word + pos + typ).reshape(B * S, H)
    x = layernorm(emb, prepped["emb_ln_g"], prepped["emb_ln_b"], out_dtype=cdtype)

    # additive attention mask, (B, 1, 1, S), kept in f32
    add_mask = ((1.0 - attention_mask.astype(jnp.float32)) * -1e9)[:, None, None, :]

    # --- transformer layers ------------------------------------------------------
    for lp in prepped["layers"]:
        qkv = dense(x, lp["wqkv"], lp["bqkv"])                        # (B*S, 3H)
        qkv = qkv.reshape(B, S, 3, nH, Dh).transpose(2, 0, 3, 1, 4)   # (3,B,nH,S,Dh)
        ctx = attention(qkv[0], qkv[1], qkv[2], add_mask)             # (B,nH,S,Dh)
        ctx = ctx.transpose(0, 2, 1, 3).reshape(B * S, H)
        x = dense_add_ln(ctx, lp["wo"], lp["bo"], x, lp["ln1_g"], lp["ln1_b"])
        x = ffn_fused(x, lp["wi"], lp["bi"], lp["wo2"], lp["bo2"],
                      lp["ln2_g"], lp["ln2_b"])

    last_hidden = x.reshape(B, S, H)

    # --- gather [MASK] positions FIRST, then project only those rows -------------
    # (exactly one id==103 per row, asserted in __main__ — argmax picks row 0
    #  silently if a row has no mask, same caveat as the reference torch.where)
    is_mask = (input_ids == MASK_TOKEN_ID)
    y_idxs = jnp.argmax(is_mask, axis=1)
    x_idxs = jnp.arange(B)
    mask_hidden = last_hidden[x_idxs, y_idxs]                         # (B, H)

    # --- MLM head on (B, H) rows with pre-sliced tied decoder (H, rels_num) ------
    out_logits = mlm_head(mask_hidden,
                          prepped["mlm_dense_w"], prepped["mlm_dense_b"],
                          prepped["mlm_ln_g"], prepped["mlm_ln_b"],
                          prepped["dec_w"], prepped["dec_b"])         # (B, rels_num)

    if not return_mask_hidden:
        return out_logits
    mask_hidden_f = mask_hidden.astype(jnp.float32)
    if not return_cls_hidden:
        return out_logits, mask_hidden_f
    cls_hidden = last_hidden[:, 0, :].astype(jnp.float32)             # (B, H)
    return out_logits, mask_hidden_f, cls_hidden


# ----------------------------------------------------------------------------
if __name__ == "__main__":
    rels_num = 4
    # base vocab 120 (so token id 103 == [MASK] exists), resized by 1 + 4 + rels_num
    cfg = dict(vocab=120 + 1 + 4 + rels_num, hidden=32, layers=2, heads=2,
               intermediate=64, max_pos=16, type_vocab=2)

    params = init_params(jax.random.PRNGKey(0), cfg)
    prepped = prepare_params(params, cfg, rels_num)

    B, S = 2, 8
    kid = jax.random.PRNGKey(1)
    input_ids = jax.random.randint(kid, (B, S), 0, 100, dtype=jnp.int32)  # never 103
    input_ids = input_ids.at[0, 3].set(MASK_TOKEN_ID)
    input_ids = input_ids.at[1, 5].set(MASK_TOKEN_ID)
    assert int(jnp.sum(input_ids == MASK_TOKEN_ID)) == B  # mirrors the torch assert
    attention_mask = jnp.ones((B, S), jnp.int32)
    token_type_ids = jnp.zeros((B, S), jnp.int32)

    @jax.jit
    def fwd(ii, am, tt):
        return bert_encoder_forward(prepped, cfg, ii, am, tt, rels_num,
                                    return_mask_hidden=True, return_cls_hidden=True)

    out = jax.block_until_ready(fwd(input_ids, attention_mask, token_type_ids))
    logits, mask_hidden, cls_hidden = out
    assert logits.shape == (B, rels_num)
    assert mask_hidden.shape == (B, cfg["hidden"])
    assert cls_hidden.shape == (B, cfg["hidden"])
    print("KERNEL_OK")
</pallas_src>

<mosaic_0001>
module attributes {stable_mosaic.version = 11 : i64} {
  func.func @_dense_kernel(%arg0: i32, %arg1: memref<16x32xbf16, #tpu.memory_space<vmem>>, %arg2: memref<32x96xbf16, #tpu.memory_space<vmem>>, %arg3: memref<1x96xf32, #tpu.memory_space<vmem>>, %arg4: memref<16x96xbf16, #tpu.memory_space<vmem>>) attributes {dimension_semantics = [#tpu.dimension_semantics<parallel>], iteration_bounds = array<i64: 1>, scalar_prefetch = 0 : i64, scratch_operands = 0 : i64, tpu.core_type = #tpu.core_type<tc>, window_params = [{transform_indices = @transform_0, window_bounds = array<i64: 16, 32>}, {pipeline_mode = #tpu.pipeline_mode<synchronous>, transform_indices = @transform_1, window_bounds = array<i64: 32, 96>}, {pipeline_mode = #tpu.pipeline_mode<synchronous>, transform_indices = @transform_2, window_bounds = array<i64: 1, 96>}, {transform_indices = @transform_3, window_bounds = array<i64: 16, 96>}]} {
    %c0 = arith.constant 0 : index
    %c0_0 = arith.constant 0 : index
    %0 = vector.load %arg1[%c0, %c0_0] : memref<16x32xbf16, #tpu.memory_space<vmem>>, vector<16x32xbf16>
    %c0_1 = arith.constant 0 : index
    %c0_2 = arith.constant 0 : index
    %1 = vector.load %arg2[%c0_1, %c0_2] : memref<32x96xbf16, #tpu.memory_space<vmem>>, vector<32x96xbf16>
    %cst = arith.constant dense<0.000000e+00> : vector<16x96xf32>
    %2 = tpu.matmul %0, %1, %cst {dimension_numbers = #tpu.dot_dimension_numbers<[1], [0], [0], [1], [0, 0, 1, 1], [], []>} : vector<16x32xbf16>, vector<32x96xbf16>, vector<16x96xf32> -> vector<16x96xf32>
    %c0_3 = arith.constant 0 : index
    %c0_4 = arith.constant 0 : index
    %3 = vector.load %arg3[%c0_3, %c0_4] : memref<1x96xf32, #tpu.memory_space<vmem>>, vector<1x96xf32>
    %4 = vector.broadcast %3 : vector<1x96xf32> to vector<16x96xf32>
    %5 = arith.addf %2, %4 : vector<16x96xf32>
    %6 = arith.truncf %5 : vector<16x96xf32> to vector<16x96xbf16>
    %c0_5 = arith.constant 0 : index
    %c0_6 = arith.constant 0 : index
    %7 = vector.load %arg4[%c0_5, %c0_6] : memref<16x96xbf16, #tpu.memory_space<vmem>>, vector<16x96xbf16>
    tpu.vector_store %arg4[%c0_5, %c0_6], %6 {strides = array<i32>} : memref<16x96xbf16, #tpu.memory_space<vmem>>, vector<16x96xbf16>,
    return
  }
  func.func @transform_0(%arg0: i32) -> (i32, i32) {
    %c0_i32 = arith.constant 0 : i32
    %c0_i32_0 = arith.constant 0 : i32
    return %arg0, %c0_i32 : i32, i32
  }
  func.func @transform_1(%arg0: i32) -> (i32, i32) {
    %c0_i32 = arith.constant 0 : i32
    %c0_i32_0 = arith.constant 0 : i32
    %c0_i32_1 = arith.constant 0 : i32
    return %c0_i32, %c0_i32_0 : i32, i32
  }
  func.func @transform_2(%arg0: i32) -> (i32, i32) {
    %c0_i32 = arith.constant 0 : i32
    %c0_i32_0 = arith.constant 0 : i32
    %c0_i32_1 = arith.constant 0 : i32
    return %c0_i32, %c0_i32_0 : i32, i32
  }
  func.func @transform_3(%arg0: i32) -> (i32, i32) {
    %c0_i32 = arith.constant 0 : i32
    %c0_i32_0 = arith.constant 0 : i32
    return %arg0, %c0_i32 : i32, i32
  }
}

module attributes {stable_mosaic.version = 11 : i64} {
  func.func @_ln_kernel(%arg0: i32, %arg1: memref<16x32xf32, #tpu.memory_space<vmem>>, %arg2: memref<1x32xf32, #tpu.memory_space<vmem>>, %arg3: memref<1x32xf32, #tpu.memory_space<vmem>>, %arg4: memref<16x32xbf16, #tpu.memory_space<vmem>>) attributes {dimension_semantics = [#tpu.dimension_semantics<parallel>], iteration_bounds = array<i64: 1>, scalar_prefetch = 0 : i64, scratch_operands = 0 : i64, tpu.core_type = #tpu.core_type<tc>, window_params = [{transform_indices = @transform_0, window_bounds = array<i64: 16, 32>}, {pipeline_mode = #tpu.pipeline_mode<synchronous>, transform_indices = @transform_1, window_bounds = array<i64: 1, 32>}, {pipeline_mode = #tpu.pipeline_mode<synchronous>, transform_indices = @transform_2, window_bounds = array<i64: 1, 32>}, {transform_indices = @transform_3, window_bounds = array<i64: 16, 32>}]} {
    %c0 = arith.constant 0 : index
    %c0_0 = arith.constant 0 : index
    %0 = vector.load %arg1[%c0, %c0_0] : memref<16x32xf32, #tpu.memory_space<vmem>>, vector<16x32xf32>
    %c0_1 = arith.constant 0 : index
    %c0_2 = arith.constant 0 : index
    %1 = vector.load %arg2[%c0_1, %c0_2] : memref<1x32xf32, #tpu.memory_space<vmem>>, vector<1x32xf32>
    %c0_3 = arith.constant 0 : index
    %c0_4 = arith.constant 0 : index
    %2 = vector.load %arg3[%c0_3, %c0_4] : memref<1x32xf32, #tpu.memory_space<vmem>>, vector<1x32xf32>
    %cst = arith.constant dense<0.000000e+00> : vector<16xf32>
    %3 = vector.multi_reduction <add>, %0, %cst [1] : vector<16x32xf32> to vector<16xf32>
    %4 = vector.shape_cast %3 : vector<16xf32> to vector<16x1xf32>
    %cst_5 = arith.constant 3.200000e+01 : f32
    %5 = vector.broadcast %cst_5 : f32 to vector<16x1xf32>
    %6 = arith.divf %4, %5 : vector<16x1xf32>
    %7 = vector.broadcast %6 : vector<16x1xf32> to vector<16x32xf32>
    %8 = arith.subf %0, %7 : vector<16x32xf32>
    %9 = arith.mulf %8, %8 : vector<16x32xf32>
    %cst_6 = arith.constant dense<0.000000e+00> : vector<16xf32>
    %10 = vector.multi_reduction <add>, %9, %cst_6 [1] : vector<16x32xf32> to vector<16xf32>
    %11 = vector.shape_cast %10 : vector<16xf32> to vector<16x1xf32>
    %cst_7 = arith.constant 3.200000e+01 : f32
    %12 = vector.broadcast %cst_7 : f32 to vector<16x1xf32>
    %13 = arith.divf %11, %12 : vector<16x1xf32>
    %14 = vector.broadcast %6 : vector<16x1xf32> to vector<16x32xf32>
    %15 = arith.subf %0, %14 : vector<16x32xf32>
    %cst_8 = arith.constant 9.99999996E-13 : f32
    %16 = vector.broadcast %cst_8 : f32 to vector<16x1xf32>
    %17 = arith.addf %13, %16 : vector<16x1xf32>
    %18 = math.rsqrt %17 : vector<16x1xf32>
    %19 = vector.broadcast %18 : vector<16x1xf32> to vector<16x32xf32>
    %20 = arith.mulf %15, %19 : vector<16x32xf32>
    %21 = vector.broadcast %1 : vector<1x32xf32> to vector<16x32xf32>
    %22 = arith.mulf %20, %21 : vector<16x32xf32>
    %23 = vector.broadcast %2 : vector<1x32xf32> to vector<16x32xf32>
    %24 = arith.addf %22, %23 : vector<16x32xf32>
    %25 = arith.truncf %24 : vector<16x32xf32> to vector<16x32xbf16>
    %c0_9 = arith.constant 0 : index
    %c0_10 = arith.constant 0 : index
    %26 = vector.load %arg4[%c0_9, %c0_10] : memref<16x32xbf16, #tpu.memory_space<vmem>>, vector<16x32xbf16>
    tpu.vector_store %arg4[%c0_9, %c0_10], %25 {strides = array<i32>} : memref<16x32xbf16, #tpu.memory_space<vmem>>, vector<16x32xbf16>,
    return
  }
  func.func @transform_0(%arg0: i32) -> (i32, i32) {
    %c0_i32 = arith.constant 0 : i32
    %c0_i32_0 = arith.constant 0 : i32
    return %arg0, %c0_i32 : i32, i32
  }
  func.func @transform_1(%arg0: i32) -> (i32, i32) {
    %c0_i32 = arith.constant 0 : i32
    %c0_i32_0 = arith.constant 0 : i32
    %c0_i32_1 = arith.constant 0 : i32
    return %c0_i32, %c0_i32_0 : i32, i32
  }
  func.func @transform_2(%arg0: i32) -> (i32, i32) {
    %c0_i32 = arith.constant 0 : i32
    %c0_i32_0 = arith.constant 0 : i32
    %c0_i32_1 = arith.constant 0 : i32
    return %c0_i32, %c0_i32_0 : i32, i32
  }
  func.func @transform_3(%arg0: i32) -> (i32, i32) {
    %c0_i32 = arith.constant 0 : i32
    %c0_i32_0 = arith.constant 0 : i32
    return %arg0, %c0_i32 : i32, i32
  }
}

module attributes {stable_mosaic.version = 11 : i64} {
  func.func @_attention_kernel(%arg0: i32, %arg1: i32, %arg2: memref<1x1x8x16xbf16, #tpu.memory_space<vmem>>, %arg3: memref<1x1x8x16xbf16, #tpu.memory_space<vmem>>, %arg4: memref<1x1x8x16xbf16, #tpu.memory_space<vmem>>, %arg5: memref<1x1x1x8xf32, #tpu.memory_space<vmem>>, %arg6: memref<1x1x8x16xbf16, #tpu.memory_space<vmem>>) attributes {dimension_semantics = [#tpu.dimension_semantics<parallel>, #tpu.dimension_semantics<parallel>], iteration_bounds = array<i64: 2, 2>, scalar_prefetch = 0 : i64, scratch_operands = 0 : i64, tpu.core_type = #tpu.core_type<tc>, window_params = [{transform_indices = @transform_0, window_bounds = array<i64: 1, 1, 8, 16>}, {transform_indices = @transform_1, window_bounds = array<i64: 1, 1, 8, 16>}, {transform_indices = @transform_2, window_bounds = array<i64: 1, 1, 8, 16>}, {transform_indices = @transform_3, window_bounds = array<i64: 1, 1, 1, 8>}, {transform_indices = @transform_4, window_bounds = array<i64: 1, 1, 8, 16>}]} {
    %c0 = arith.constant 0 : index
    %c0_0 = arith.constant 0 : index
    %c0_1 = arith.constant 0 : index
    %c0_2 = arith.constant 0 : index
    %0 = vector.load %arg2[%c0, %c0_0, %c0_1, %c0_2] : memref<1x1x8x16xbf16, #tpu.memory_space<vmem>>, vector<1x1x8x16xbf16>
    %1 = vector.shape_cast %0 : vector<1x1x8x16xbf16> to vector<8x16xbf16>
    %c0_3 = arith.constant 0 : index
    %c0_4 = arith.constant 0 : index
    %c0_5 = arith.constant 0 : index
    %c0_6 = arith.constant 0 : index
    %2 = vector.load %arg3[%c0_3, %c0_4, %c0_5, %c0_6] : memref<1x1x8x16xbf16, #tpu.memory_space<vmem>>, vector<1x1x8x16xbf16>
    %3 = vector.shape_cast %2 : vector<1x1x8x16xbf16> to vector<8x16xbf16>
    %cst = arith.constant dense<0.000000e+00> : vector<8x8xf32>
    %4 = tpu.matmul %1, %3, %cst {dimension_numbers = #tpu.dot_dimension_numbers<[1], [1], [0], [0], [0, 0, 1, 0], [], []>} : vector<8x16xbf16>, vector<8x16xbf16>, vector<8x8xf32> -> vector<8x8xf32>
    %c0_7 = arith.constant 0 : index
    %c0_8 = arith.constant 0 : index
    %c0_9 = arith.constant 0 : index
    %c0_10 = arith.constant 0 : index
    %5 = vector.load %arg5[%c0_7, %c0_8, %c0_9, %c0_10] : memref<1x1x1x8xf32, #tpu.memory_space<vmem>>, vector<1x1x1x8xf32>
    %6 = vector.shape_cast %5 : vector<1x1x1x8xf32> to vector<1x8xf32>
    %7 = vector.broadcast %6 : vector<1x8xf32> to vector<8x8xf32>
    %8 = arith.addf %4, %7 : vector<8x8xf32>
    %cst_11 = arith.constant dense<0xFF800000> : vector<8xf32>
    %9 = vector.multi_reduction <maximumf>, %8, %cst_11 [1] : vector<8x8xf32> to vector<8xf32>
    %10 = vector.shape_cast %9 : vector<8xf32> to vector<8x1xf32>
    %11 = vector.broadcast %10 : vector<8x1xf32> to vector<8x8xf32>
    %12 = arith.subf %8, %11 : vector<8x8xf32>
    %13 = math.exp %12 : vector<8x8xf32>
    %cst_12 = arith.constant dense<0.000000e+00> : vector<8xf32>
    %14 = vector.multi_reduction <add>, %13, %cst_12 [1] : vector<8x8xf32> to vector<8xf32>
    %15 = vector.shape_cast %14 : vector<8xf32> to vector<8x1xf32>
    %16 = tpu.reciprocal %15 {approx = true} : vector<8x1xf32> -> vector<8x1xf32>
    %17 = vector.broadcast %16 : vector<8x1xf32> to vector<8x8xf32>
    %18 = arith.mulf %13, %17 : vector<8x8xf32>
    %19 = arith.truncf %18 : vector<8x8xf32> to vector<8x8xbf16>
    %c0_13 = arith.constant 0 : index
    %c0_14 = arith.constant 0 : index
    %c0_15 = arith.constant 0 : index
    %c0_16 = arith.constant 0 : index
    %20 = vector.load %arg4[%c0_13, %c0_14, %c0_15, %c0_16] : memref<1x1x8x16xbf16, #tpu.memory_space<vmem>>, vector<1x1x8x16xbf16>
    %21 = vector.shape_cast %20 : vector<1x1x8x16xbf16> to vector<8x16xbf16>
    %cst_17 = arith.constant dense<0.000000e+00> : vector<8x16xf32>
    %22 = tpu.matmul %19, %21, %cst_17 {dimension_numbers = #tpu.dot_dimension_numbers<[1], [0], [0], [1], [0, 0, 1, 1], [], []>} : vector<8x8xbf16>, vector<8x16xbf16>, vector<8x16xf32> -> vector<8x16xf32>
    %23 = arith.truncf %22 : vector<8x16xf32> to vector<8x16xbf16>
    %c0_18 = arith.constant 0 : index
    %c0_19 = arith.constant 0 : index
    %c0_20 = arith.constant 0 : index
    %c0_21 = arith.constant 0 : index
    %24 = vector.load %arg6[%c0_18, %c0_19, %c0_20, %c0_21] : memref<1x1x8x16xbf16, #tpu.memory_space<vmem>>, vector<1x1x8x16xbf16>
    %25 = vector.shape_cast %24 : vector<1x1x8x16xbf16> to vector<8x16xbf16>
    %26 = vector.shape_cast %23 : vector<8x16xbf16> to vector<1x1x8x16xbf16>
    tpu.vector_store %arg6[%c0_18, %c0_19, %c0_20, %c0_21], %26 {strides = array<i32>} : memref<1x1x8x16xbf16, #tpu.memory_space<vmem>>, vector<1x1x8x16xbf16>,
    return
  }
  func.func @transform_0(%arg0: i32, %arg1: i32) -> (i32, i32, i32, i32) {
    %c0_i32 = arith.constant 0 : i32
    %c0_i32_0 = arith.constant 0 : i32
    %c0_i32_1 = arith.constant 0 : i32
    return %arg0, %arg1, %c0_i32, %c0_i32_0 : i32, i32, i32, i32
  }
  func.func @transform_1(%arg0: i32, %arg1: i32) -> (i32, i32, i32, i32) {
    %c0_i32 = arith.constant 0 : i32
    %c0_i32_0 = arith.constant 0 : i32
    %c0_i32_1 = arith.constant 0 : i32
    return %arg0, %arg1, %c0_i32, %c0_i32_0 : i32, i32, i32, i32
  }
  func.func @transform_2(%arg0: i32, %arg1: i32) -> (i32, i32, i32, i32) {
    %c0_i32 = arith.constant 0 : i32
    %c0_i32_0 = arith.constant 0 : i32
    %c0_i32_1 = arith.constant 0 : i32
    return %arg0, %arg1, %c0_i32, %c0_i32_0 : i32, i32, i32, i32
  }
  func.func @transform_3(%arg0: i32, %arg1: i32) -> (i32, i32, i32, i32) {
    %c0_i32 = arith.constant 0 : i32
    %c0_i32_0 = arith.constant 0 : i32
    %c0_i32_1 = arith.constant 0 : i32
    %c0_i32_2 = arith.constant 0 : i32
    return %arg0, %c0_i32, %c0_i32_0, %c0_i32_1 : i32, i32, i32, i32
  }
  func.func @transform_4(%arg0: i32, %arg1: i32) -> (i32, i32, i32, i32) {
    %c0_i32 = arith.constant 0 : i32
    %c0_i32_0 = arith.constant 0 : i32
    %c0_i32_1 = arith.constant 0 : i32
    return %arg0, %arg1, %c0_i32, %c0_i32_0 : i32, i32, i32, i32
  }
}

module attributes {stable_mosaic.version = 11 : i64} {
  func.func @_dense_add_ln_kernel(%arg0: i32, %arg1: memref<16x32xbf16, #tpu.memory_space<vmem>>, %arg2: memref<32x32xbf16, #tpu.memory_space<vmem>>, %arg3: memref<1x32xf32, #tpu.memory_space<vmem>>, %arg4: memref<16x32xbf16, #tpu.memory_space<vmem>>, %arg5: memref<1x32xf32, #tpu.memory_space<vmem>>, %arg6: memref<1x32xf32, #tpu.memory_space<vmem>>, %arg7: memref<16x32xbf16, #tpu.memory_space<vmem>>) attributes {dimension_semantics = [#tpu.dimension_semantics<parallel>], iteration_bounds = array<i64: 1>, scalar_prefetch = 0 : i64, scratch_operands = 0 : i64, tpu.core_type = #tpu.core_type<tc>, window_params = [{transform_indices = @transform_0, window_bounds = array<i64: 16, 32>}, {pipeline_mode = #tpu.pipeline_mode<synchronous>, transform_indices = @transform_1, window_bounds = array<i64: 32, 32>}, {pipeline_mode = #tpu.pipeline_mode<synchronous>, transform_indices = @transform_2, window_bounds = array<i64: 1, 32>}, {transform_indices = @transform_3, window_bounds = array<i64: 16, 32>}, {pipeline_mode = #tpu.pipeline_mode<synchronous>, transform_indices = @transform_4, window_bounds = array<i64: 1, 32>}, {pipeline_mode = #tpu.pipeline_mode<synchronous>, transform_indices = @transform_5, window_bounds = array<i64: 1, 32>}, {transform_indices = @transform_6, window_bounds = array<i64: 16, 32>}]} {
    %c0 = arith.constant 0 : index
    %c0_0 = arith.constant 0 : index
    %0 = vector.load %arg1[%c0, %c0_0] : memref<16x32xbf16, #tpu.memory_space<vmem>>, vector<16x32xbf16>
    %c0_1 = arith.constant 0 : index
    %c0_2 = arith.constant 0 : index
    %1 = vector.load %arg2[%c0_1, %c0_2] : memref<32x32xbf16, #tpu.memory_space<vmem>>, vector<32x32xbf16>
    %cst = arith.constant dense<0.000000e+00> : vector<16x32xf32>
    %2 = tpu.matmul %0, %1, %cst {dimension_numbers = #tpu.dot_dimension_numbers<[1], [0], [0], [1], [0, 0, 1, 1], [], []>} : vector<16x32xbf16>, vector<32x32xbf16>, vector<16x32xf32> -> vector<16x32xf32>
    %c0_3 = arith.constant 0 : index
    %c0_4 = arith.constant 0 : index
    %3 = vector.load %arg3[%c0_3, %c0_4] : memref<1x32xf32, #tpu.memory_space<vmem>>, vector<1x32xf32>
    %4 = vector.broadcast %3 : vector<1x32xf32> to vector<16x32xf32>
    %5 = arith.addf %2, %4 : vector<16x32xf32>
    %c0_5 = arith.constant 0 : index
    %c0_6 = arith.constant 0 : index
    %6 = vector.load %arg4[%c0_5, %c0_6] : memref<16x32xbf16, #tpu.memory_space<vmem>>, vector<16x32xbf16>
    %7 = arith.extf %6 : vector<16x32xbf16> to vector<16x32xf32>
    %8 = arith.addf %5, %7 : vector<16x32xf32>
    %c0_7 = arith.constant 0 : index
    %c0_8 = arith.constant 0 : index
    %9 = vector.load %arg5[%c0_7, %c0_8] : memref<1x32xf32, #tpu.memory_space<vmem>>, vector<1x32xf32>
    %c0_9 = arith.constant 0 : index
    %c0_10 = arith.constant 0 : index
    %10 = vector.load %arg6[%c0_9, %c0_10] : memref<1x32xf32, #tpu.memory_space<vmem>>, vector<1x32xf32>
    %cst_11 = arith.constant dense<0.000000e+00> : vector<16xf32>
    %11 = vector.multi_reduction <add>, %8, %cst_11 [1] : vector<16x32xf32> to vector<16xf32>
    %12 = vector.shape_cast %11 : vector<16xf32> to vector<16x1xf32>
    %cst_12 = arith.constant 3.200000e+01 : f32
    %13 = vector.broadcast %cst_12 : f32 to vector<16x1xf32>
    %14 = arith.divf %12, %13 : vector<16x1xf32>
    %15 = vector.broadcast %14 : vector<16x1xf32> to vector<16x32xf32>
    %16 = arith.subf %8, %15 : vector<16x32xf32>
    %17 = arith.mulf %16, %16 : vector<16x32xf32>
    %cst_13 = arith.constant dense<0.000000e+00> : vector<16xf32>
    %18 = vector.multi_reduction <add>, %17, %cst_13 [1] : vector<16x32xf32> to vector<16xf32>
    %19 = vector.shape_cast %18 : vector<16xf32> to vector<16x1xf32>
    %cst_14 = arith.constant 3.200000e+01 : f32
    %20 = vector.broadcast %cst_14 : f32 to vector<16x1xf32>
    %21 = arith.divf %19, %20 : vector<16x1xf32>
    %22 = vector.broadcast %14 : vector<16x1xf32> to vector<16x32xf32>
    %23 = arith.subf %8, %22 : vector<16x32xf32>
    %cst_15 = arith.constant 9.99999996E-13 : f32
    %24 = vector.broadcast %cst_15 : f32 to vector<16x1xf32>
    %25 = arith.addf %21, %24 : vector<16x1xf32>
    %26 = math.rsqrt %25 : vector<16x1xf32>
    %27 = vector.broadcast %26 : vector<16x1xf32> to vector<16x32xf32>
    %28 = arith.mulf %23, %27 : vector<16x32xf32>
    %29 = vector.broadcast %9 : vector<1x32xf32> to vector<16x32xf32>
    %30 = arith.mulf %28, %29 : vector<16x32xf32>
    %31 = vector.broadcast %10 : vector<1x32xf32> to vector<16x32xf32>
    %32 = arith.addf %30, %31 : vector<16x32xf32>
    %33 = arith.truncf %32 : vector<16x32xf32> to vector<16x32xbf16>
    %c0_16 = arith.constant 0 : index
    %c0_17 = arith.constant 0 : index
    %34 = vector.load %arg7[%c0_16, %c0_17] : memref<16x32xbf16, #tpu.memory_space<vmem>>, vector<16x32xbf16>
    tpu.vector_store %arg7[%c0_16, %c0_17], %33 {strides = array<i32>} : memref<16x32xbf16, #tpu.memory_space<vmem>>, vector<16x32xbf16>,
    return
  }
  func.func @transform_0(%arg0: i32) -> (i32, i32) {
    %c0_i32 = arith.constant 0 : i32
    %c0_i32_0 = arith.constant 0 : i32
    return %arg0, %c0_i32 : i32, i32
  }
  func.func @transform_1(%arg0: i32) -> (i32, i32) {
    %c0_i32 = arith.constant 0 : i32
    %c0_i32_0 = arith.constant 0 : i32
    %c0_i32_1 = arith.constant 0 : i32
    return %c0_i32, %c0_i32_0 : i32, i32
  }
  func.func @transform_2(%arg0: i32) -> (i32, i32) {
    %c0_i32 = arith.constant 0 : i32
    %c0_i32_0 = arith.constant 0 : i32
    %c0_i32_1 = arith.constant 0 : i32
    return %c0_i32, %c0_i32_0 : i32, i32
  }
  func.func @transform_3(%arg0: i32) -> (i32, i32) {
    %c0_i32 = arith.constant 0 : i32
    %c0_i32_0 = arith.constant 0 : i32
    return %arg0, %c0_i32 : i32, i32
  }
  func.func @transform_4(%arg0: i32) -> (i32, i32) {
    %c0_i32 = arith.constant 0 : i32
    %c0_i32_0 = arith.constant 0 : i32
    %c0_i32_1 = arith.constant 0 : i32
    return %c0_i32, %c0_i32_0 : i32, i32
  }
  func.func @transform_5(%arg0: i32) -> (i32, i32) {
    %c0_i32 = arith.constant 0 : i32
    %c0_i32_0 = arith.constant 0 : i32
    %c0_i32_1 = arith.constant 0 : i32
    return %c0_i32, %c0_i32_0 : i32, i32
  }
  func.func @transform_6(%arg0: i32) -> (i32, i32) {
    %c0_i32 = arith.constant 0 : i32
    %c0_i32_0 = arith.constant 0 : i32
    return %arg0, %c0_i32 : i32, i32
  }
}

module attributes {stable_mosaic.version = 11 : i64} {
  func.func @_ffn_kernel(%arg0: i32, %arg1: memref<16x32xbf16, #tpu.memory_space<vmem>>, %arg2: memref<32x64xbf16, #tpu.memory_space<vmem>>, %arg3: memref<1x64xf32, #tpu.memory_space<vmem>>, %arg4: memref<64x32xbf16, #tpu.memory_space<vmem>>, %arg5: memref<1x32xf32, #tpu.memory_space<vmem>>, %arg6: memref<1x32xf32, #tpu.memory_space<vmem>>, %arg7: memref<1x32xf32, #tpu.memory_space<vmem>>, %arg8: memref<16x32xbf16, #tpu.memory_space<vmem>>) attributes {dimension_semantics = [#tpu.dimension_semantics<parallel>], iteration_bounds = array<i64: 1>, scalar_prefetch = 0 : i64, scratch_operands = 0 : i64, tpu.core_type = #tpu.core_type<tc>, window_params = [{transform_indices = @transform_0, window_bounds = array<i64: 16, 32>}, {pipeline_mode = #tpu.pipeline_mode<synchronous>, transform_indices = @transform_1, window_bounds = array<i64: 32, 64>}, {pipeline_mode = #tpu.pipeline_mode<synchronous>, transform_indices = @transform_2, window_bounds = array<i64: 1, 64>}, {pipeline_mode = #tpu.pipeline_mode<synchronous>, transform_indices = @transform_3, window_bounds = array<i64: 64, 32>}, {pipeline_mode = #tpu.pipeline_mode<synchronous>, transform_indices = @transform_4, window_bounds = array<i64: 1, 32>}, {pipeline_mode = #tpu.pipeline_mode<synchronous>, transform_indices = @transform_5, window_bounds = array<i64: 1, 32>}, {pipeline_mode = #tpu.pipeline_mode<synchronous>, transform_indices = @transform_6, window_bounds = array<i64: 1, 32>}, {transform_indices = @transform_7, window_bounds = array<i64: 16, 32>}]} {
    %c0 = arith.constant 0 : index
    %c0_0 = arith.constant 0 : index
    %0 = vector.load %arg1[%c0, %c0_0] : memref<16x32xbf16, #tpu.memory_space<vmem>>, vector<16x32xbf16>
    %c0_1 = arith.constant 0 : index
    %c0_2 = arith.constant 0 : index
    %1 = vector.load %arg2[%c0_1, %c0_2] : memref<32x64xbf16, #tpu.memory_space<vmem>>, vector<32x64xbf16>
    %cst = arith.constant dense<0.000000e+00> : vector<16x64xf32>
    %2 = tpu.matmul %0, %1, %cst {dimension_numbers = #tpu.dot_dimension_numbers<[1], [0], [0], [1], [0, 0, 1, 1], [], []>} : vector<16x32xbf16>, vector<32x64xbf16>, vector<16x64xf32> -> vector<16x64xf32>
    %c0_3 = arith.constant 0 : index
    %c0_4 = arith.constant 0 : index
    %3 = vector.load %arg3[%c0_3, %c0_4] : memref<1x64xf32, #tpu.memory_space<vmem>>, vector<1x64xf32>
    %4 = vector.broadcast %3 : vector<1x64xf32> to vector<16x64xf32>
    %5 = arith.addf %2, %4 : vector<16x64xf32>
    %cst_5 = arith.constant 5.000000e-01 : f32
    %6 = vector.broadcast %cst_5 : f32 to vector<16x64xf32>
    %7 = arith.mulf %6, %5 : vector<16x64xf32>
    %cst_6 = arith.constant 4.471500e-02 : f32
    %8 = vector.broadcast %cst_6 : f32 to vector<16x64xf32>
    %9 = arith.mulf %8, %5 : vector<16x64xf32>
    %10 = arith.mulf %9, %5 : vector<16x64xf32>
    %11 = arith.mulf %10, %5 : vector<16x64xf32>
    %12 = arith.addf %5, %11 : vector<16x64xf32>
    %cst_7 = arith.constant 0.797884583 : f32
    %13 = vector.broadcast %cst_7 : f32 to vector<16x64xf32>
    %14 = arith.mulf %13, %12 : vector<16x64xf32>
    %15 = math.tanh %14 : vector<16x64xf32>
    %cst_8 = arith.constant 1.000000e+00 : f32
    %16 = vector.broadcast %cst_8 : f32 to vector<16x64xf32>
    %17 = arith.addf %16, %15 : vector<16x64xf32>
    %18 = arith.mulf %7, %17 : vector<16x64xf32>
    %19 = arith.truncf %18 : vector<16x64xf32> to vector<16x64xbf16>
    %c0_9 = arith.constant 0 : index
    %c0_10 = arith.constant 0 : index
    %20 = vector.load %arg4[%c0_9, %c0_10] : memref<64x32xbf16, #tpu.memory_space<vmem>>, vector<64x32xbf16>
    %cst_11 = arith.constant dense<0.000000e+00> : vector<16x32xf32>
    %21 = tpu.matmul %19, %20, %cst_11 {dimension_numbers = #tpu.dot_dimension_numbers<[1], [0], [0], [1], [0, 0, 1, 1], [], []>} : vector<16x64xbf16>, vector<64x32xbf16>, vector<16x32xf32> -> vector<16x32xf32>
    %c0_12 = arith.constant 0 : index
    %c0_13 = arith.constant 0 : index
    %22 = vector.load %arg5[%c0_12, %c0_13] : memref<1x32xf32, #tpu.memory_space<vmem>>, vector<1x32xf32>
    %23 = vector.broadcast %22 : vector<1x32xf32> to vector<16x32xf32>
    %24 = arith.addf %21, %23 : vector<16x32xf32>
    %25 = arith.extf %0 : vector<16x32xbf16> to vector<16x32xf32>
    %26 = arith.addf %24, %25 : vector<16x32xf32>
    %c0_14 = arith.constant 0 : index
    %c0_15 = arith.constant 0 : index
    %27 = vector.load %arg6[%c0_14, %c0_15] : memref<1x32xf32, #tpu.memory_space<vmem>>, vector<1x32xf32>
    %c0_16 = arith.constant 0 : index
    %c0_17 = arith.constant 0 : index
    %28 = vector.load %arg7[%c0_16, %c0_17] : memref<1x32xf32, #tpu.memory_space<vmem>>, vector<1x32xf32>
    %cst_18 = arith.constant dense<0.000000e+00> : vector<16xf32>
    %29 = vector.multi_reduction <add>, %26, %cst_18 [1] : vector<16x32xf32> to vector<16xf32>
    %30 = vector.shape_cast %29 : vector<16xf32> to vector<16x1xf32>
    %cst_19 = arith.constant 3.200000e+01 : f32
    %31 = vector.broadcast %cst_19 : f32 to vector<16x1xf32>
    %32 = arith.divf %30, %31 : vector<16x1xf32>
    %33 = vector.broadcast %32 : vector<16x1xf32> to vector<16x32xf32>
    %34 = arith.subf %26, %33 : vector<16x32xf32>
    %35 = arith.mulf %34, %34 : vector<16x32xf32>
    %cst_20 = arith.constant dense<0.000000e+00> : vector<16xf32>
    %36 = vector.multi_reduction <add>, %35, %cst_20 [1] : vector<16x32xf32> to vector<16xf32>
    %37 = vector.shape_cast %36 : vector<16xf32> to vector<16x1xf32>
    %cst_21 = arith.constant 3.200000e+01 : f32
    %38 = vector.broadcast %cst_21 : f32 to vector<16x1xf32>
    %39 = arith.divf %37, %38 : vector<16x1xf32>
    %40 = vector.broadcast %32 : vector<16x1xf32> to vector<16x32xf32>
    %41 = arith.subf %26, %40 : vector<16x32xf32>
    %cst_22 = arith.constant 9.99999996E-13 : f32
    %42 = vector.broadcast %cst_22 : f32 to vector<16x1xf32>
    %43 = arith.addf %39, %42 : vector<16x1xf32>
    %44 = math.rsqrt %43 : vector<16x1xf32>
    %45 = vector.broadcast %44 : vector<16x1xf32> to vector<16x32xf32>
    %46 = arith.mulf %41, %45 : vector<16x32xf32>
    %47 = vector.broadcast %27 : vector<1x32xf32> to vector<16x32xf32>
    %48 = arith.mulf %46, %47 : vector<16x32xf32>
    %49 = vector.broadcast %28 : vector<1x32xf32> to vector<16x32xf32>
    %50 = arith.addf %48, %49 : vector<16x32xf32>
    %51 = arith.truncf %50 : vector<16x32xf32> to vector<16x32xbf16>
    %c0_23 = arith.constant 0 : index
    %c0_24 = arith.constant 0 : index
    %52 = vector.load %arg8[%c0_23, %c0_24] : memref<16x32xbf16, #tpu.memory_space<vmem>>, vector<16x32xbf16>
    tpu.vector_store %arg8[%c0_23, %c0_24], %51 {strides = array<i32>} : memref<16x32xbf16, #tpu.memory_space<vmem>>, vector<16x32xbf16>,
    return
  }
  func.func @transform_0(%arg0: i32) -> (i32, i32) {
    %c0_i32 = arith.constant 0 : i32
    %c0_i32_0 = arith.constant 0 : i32
    return %arg0, %c0_i32 : i32, i32
  }
  func.func @transform_1(%arg0: i32) -> (i32, i32) {
    %c0_i32 = arith.constant 0 : i32
    %c0_i32_0 = arith.constant 0 : i32
    %c0_i32_1 = arith.constant 0 : i32
    return %c0_i32, %c0_i32_0 : i32, i32
  }
  func.func @transform_2(%arg0: i32) -> (i32, i32) {
    %c0_i32 = arith.constant 0 : i32
    %c0_i32_0 = arith.constant 0 : i32
    %c0_i32_1 = arith.constant 0 : i32
    return %c0_i32, %c0_i32_0 : i32, i32
  }
  func.func @transform_3(%arg0: i32) -> (i32, i32) {
    %c0_i32 = arith.constant 0 : i32
    %c0_i32_0 = arith.constant 0 : i32
    %c0_i32_1 = arith.constant 0 : i32
    return %c0_i32, %c0_i32_0 : i32, i32
  }
  func.func @transform_4(%arg0: i32) -> (i32, i32) {
    %c0_i32 = arith.constant 0 : i32
    %c0_i32_0 = arith.constant 0 : i32
    %c0_i32_1 = arith.constant 0 : i32
    return %c0_i32, %c0_i32_0 : i32, i32
  }
  func.func @transform_5(%arg0: i32) -> (i32, i32) {
    %c0_i32 = arith.constant 0 : i32
    %c0_i32_0 = arith.constant 0 : i32
    %c0_i32_1 = arith.constant 0 : i32
    return %c0_i32, %c0_i32_0 : i32, i32
  }
  func.func @transform_6(%arg0: i32) -> (i32, i32) {
    %c0_i32 = arith.constant 0 : i32
    %c0_i32_0 = arith.constant 0 : i32
    %c0_i32_1 = arith.constant 0 : i32
    return %c0_i32, %c0_i32_0 : i32, i32
  }
  func.func @transform_7(%arg0: i32) -> (i32, i32) {
    %c0_i32 = arith.constant 0 : i32
    %c0_i32_0 = arith.constant 0 : i32
    return %arg0, %c0_i32 : i32, i32
  }
}

module attributes {stable_mosaic.version = 11 : i64} {
  func.func @_mlm_head_kernel(%arg0: i32, %arg1: memref<2x32xbf16, #tpu.memory_space<vmem>>, %arg2: memref<32x32xbf16, #tpu.memory_space<vmem>>, %arg3: memref<1x32xf32, #tpu.memory_space<vmem>>, %arg4: memref<1x32xf32, #tpu.memory_space<vmem>>, %arg5: memref<1x32xf32, #tpu.memory_space<vmem>>, %arg6: memref<32x4xbf16, #tpu.memory_space<vmem>>, %arg7: memref<1x4xf32, #tpu.memory_space<vmem>>, %arg8: memref<2x4xf32, #tpu.memory_space<vmem>>) attributes {dimension_semantics = [#tpu.dimension_semantics<arbitrary>], iteration_bounds = array<i64: 1>, scalar_prefetch = 0 : i64, scratch_operands = 0 : i64, tpu.core_type = #tpu.core_type<tc>, window_params = [{pipeline_mode = #tpu.pipeline_mode<synchronous>, transform_indices = @transform_0, window_bounds = array<i64: 2, 32>}, {pipeline_mode = #tpu.pipeline_mode<synchronous>, transform_indices = @transform_1, window_bounds = array<i64: 32, 32>}, {pipeline_mode = #tpu.pipeline_mode<synchronous>, transform_indices = @transform_2, window_bounds = array<i64: 1, 32>}, {pipeline_mode = #tpu.pipeline_mode<synchronous>, transform_indices = @transform_3, window_bounds = array<i64: 1, 32>}, {pipeline_mode = #tpu.pipeline_mode<synchronous>, transform_indices = @transform_4, window_bounds = array<i64: 1, 32>}, {pipeline_mode = #tpu.pipeline_mode<synchronous>, transform_indices = @transform_5, window_bounds = array<i64: 32, 4>}, {pipeline_mode = #tpu.pipeline_mode<synchronous>, transform_indices = @transform_6, window_bounds = array<i64: 1, 4>}, {pipeline_mode = #tpu.pipeline_mode<synchronous>, transform_indices = @transform_7, window_bounds = array<i64: 2, 4>}]} {
    %c0 = arith.constant 0 : index
    %c0_0 = arith.constant 0 : index
    %0 = vector.load %arg1[%c0, %c0_0] : memref<2x32xbf16, #tpu.memory_space<vmem>>, vector<2x32xbf16>
    %c0_1 = arith.constant 0 : index
    %c0_2 = arith.constant 0 : index
    %1 = vector.load %arg2[%c0_1, %c0_2] : memref<32x32xbf16, #tpu.memory_space<vmem>>, vector<32x32xbf16>
    %cst = arith.constant dense<0.000000e+00> : vector<2x32xf32>
    %2 = tpu.matmul %0, %1, %cst {dimension_numbers = #tpu.dot_dimension_numbers<[1], [0], [0], [1], [0, 0, 1, 1], [], []>} : vector<2x32xbf16>, vector<32x32xbf16>, vector<2x32xf32> -> vector<2x32xf32>
    %c0_3 = arith.constant 0 : index
    %c0_4 = arith.constant 0 : index
    %3 = vector.load %arg3[%c0_3, %c0_4] : memref<1x32xf32, #tpu.memory_space<vmem>>, vector<1x32xf32>
    %4 = vector.broadcast %3 : vector<1x32xf32> to vector<2x32xf32>
    %5 = arith.addf %2, %4 : vector<2x32xf32>
    %cst_5 = arith.constant 5.000000e-01 : f32
    %6 = vector.broadcast %cst_5 : f32 to vector<2x32xf32>
    %7 = arith.mulf %6, %5 : vector<2x32xf32>
    %cst_6 = arith.constant 4.471500e-02 : f32
    %8 = vector.broadcast %cst_6 : f32 to vector<2x32xf32>
    %9 = arith.mulf %8, %5 : vector<2x32xf32>
    %10 = arith.mulf %9, %5 : vector<2x32xf32>
    %11 = arith.mulf %10, %5 : vector<2x32xf32>
    %12 = arith.addf %5, %11 : vector<2x32xf32>
    %cst_7 = arith.constant 0.797884583 : f32
    %13 = vector.broadcast %cst_7 : f32 to vector<2x32xf32>
    %14 = arith.mulf %13, %12 : vector<2x32xf32>
    %15 = math.tanh %14 : vector<2x32xf32>
    %cst_8 = arith.constant 1.000000e+00 : f32
    %16 = vector.broadcast %cst_8 : f32 to vector<2x32xf32>
    %17 = arith.addf %16, %15 : vector<2x32xf32>
    %18 = arith.mulf %7, %17 : vector<2x32xf32>
    %c0_9 = arith.constant 0 : index
    %c0_10 = arith.constant 0 : index
    %19 = vector.load %arg4[%c0_9, %c0_10] : memref<1x32xf32, #tpu.memory_space<vmem>>, vector<1x32xf32>
    %c0_11 = arith.constant 0 : index
    %c0_12 = arith.constant 0 : index
    %20 = vector.load %arg5[%c0_11, %c0_12] : memref<1x32xf32, #tpu.memory_space<vmem>>, vector<1x32xf32>
    %cst_13 = arith.constant dense<0.000000e+00> : vector<2xf32>
    %21 = vector.multi_reduction <add>, %18, %cst_13 [1] : vector<2x32xf32> to vector<2xf32>
    %22 = vector.shape_cast %21 : vector<2xf32> to vector<2x1xf32>
    %cst_14 = arith.constant 3.200000e+01 : f32
    %23 = vector.broadcast %cst_14 : f32 to vector<2x1xf32>
    %24 = arith.divf %22, %23 : vector<2x1xf32>
    %25 = vector.broadcast %24 : vector<2x1xf32> to vector<2x32xf32>
    %26 = arith.subf %18, %25 : vector<2x32xf32>
    %27 = arith.mulf %26, %26 : vector<2x32xf32>
    %cst_15 = arith.constant dense<0.000000e+00> : vector<2xf32>
    %28 = vector.multi_reduction <add>, %27, %cst_15 [1] : vector<2x32xf32> to vector<2xf32>
    %29 = vector.shape_cast %28 : vector<2xf32> to vector<2x1xf32>
    %cst_16 = arith.constant 3.200000e+01 : f32
    %30 = vector.broadcast %cst_16 : f32 to vector<2x1xf32>
    %31 = arith.divf %29, %30 : vector<2x1xf32>
    %32 = vector.broadcast %24 : vector<2x1xf32> to vector<2x32xf32>
    %33 = arith.subf %18, %32 : vector<2x32xf32>
    %cst_17 = arith.constant 9.99999996E-13 : f32
    %34 = vector.broadcast %cst_17 : f32 to vector<2x1xf32>
    %35 = arith.addf %31, %34 : vector<2x1xf32>
    %36 = math.rsqrt %35 : vector<2x1xf32>
    %37 = vector.broadcast %36 : vector<2x1xf32> to vector<2x32xf32>
    %38 = arith.mulf %33, %37 : vector<2x32xf32>
    %39 = vector.broadcast %19 : vector<1x32xf32> to vector<2x32xf32>
    %40 = arith.mulf %38, %39 : vector<2x32xf32>
    %41 = vector.broadcast %20 : vector<1x32xf32> to vector<2x32xf32>
    %42 = arith.addf %40, %41 : vector<2x32xf32>
    %43 = arith.truncf %42 : vector<2x32xf32> to vector<2x32xbf16>
    %c0_18 = arith.constant 0 : index
    %c0_19 = arith.constant 0 : index
    %44 = vector.load %arg6[%c0_18, %c0_19] : memref<32x4xbf16, #tpu.memory_space<vmem>>, vector<32x4xbf16>
    %cst_20 = arith.constant dense<0.000000e+00> : vector<2x4xf32>
    %45 = tpu.matmul %43, %44, %cst_20 {dimension_numbers = #tpu.dot_dimension_numbers<[1], [0], [0], [1], [0, 0, 1, 1], [], []>} : vector<2x32xbf16>, vector<32x4xbf16>, vector<2x4xf32> -> vector<2x4xf32>
    %c0_21 = arith.constant 0 : index
    %c0_22 = arith.constant 0 : index
    %46 = vector.load %arg7[%c0_21, %c0_22] : memref<1x4xf32, #tpu.memory_space<vmem>>, vector<1x4xf32>
    %47 = vector.broadcast %46 : vector<1x4xf32> to vector<2x4xf32>
    %48 = arith.addf %45, %47 : vector<2x4xf32>
    %c0_23 = arith.constant 0 : index
    %c0_24 = arith.constant 0 : index
    %49 = vector.load %arg8[%c0_23, %c0_24] : memref<2x4xf32, #tpu.memory_space<vmem>>, vector<2x4xf32>
    tpu.vector_store %arg8[%c0_23, %c0_24], %48 {strides = array<i32>} : memref<2x4xf32, #tpu.memory_space<vmem>>, vector<2x4xf32>,
    return
  }
  func.func @transform_0(%arg0: i32) -> (i32, i32) {
    %c0_i32 = arith.constant 0 : i32
    %c0_i32_0 = arith.constant 0 : i32
    %c0_i32_1 = arith.constant 0 : i32
    return %c0_i32, %c0_i32_0 : i32, i32
  }
  func.func @transform_1(%arg0: i32) -> (i32, i32) {
    %c0_i32 = arith.constant 0 : i32
    %c0_i32_0 = arith.constant 0 : i32
    %c0_i32_1 = arith.constant 0 : i32
    return %c0_i32, %c0_i32_0 : i32, i32
  }
  func.func @transform_2(%arg0: i32) -> (i32, i32) {
    %c0_i32 = arith.constant 0 : i32
    %c0_i32_0 = arith.constant 0 : i32
    %c0_i32_1 = arith.constant 0 : i32
    return %c0_i32, %c0_i32_0 : i32, i32
  }
  func.func @transform_3(%arg0: i32) -> (i32, i32) {
    %c0_i32 = arith.constant 0 : i32
    %c0_i32_0 = arith.constant 0 : i32
    %c0_i32_1 = arith.constant 0 : i32
    return %c0_i32, %c0_i32_0 : i32, i32
  }
  func.func @transform_4(%arg0: i32) -> (i32, i32) {
    %c0_i32 = arith.constant 0 : i32
    %c0_i32_0 = arith.constant 0 : i32
    %c0_i32_1 = arith.constant 0 : i32
    return %c0_i32, %c0_i32_0 : i32, i32
  }
  func.func @transform_5(%arg0: i32) -> (i32, i32) {
    %c0_i32 = arith.constant 0 : i32
    %c0_i32_0 = arith.constant 0 : i32
    %c0_i32_1 = arith.constant 0 : i32
    return %c0_i32, %c0_i32_0 : i32, i32
  }
  func.func @transform_6(%arg0: i32) -> (i32, i32) {
    %c0_i32 = arith.constant 0 : i32
    %c0_i32_0 = arith.constant 0 : i32
    %c0_i32_1 = arith.constant 0 : i32
    return %c0_i32, %c0_i32_0 : i32, i32
  }
  func.func @transform_7(%arg0: i32) -> (i32, i32) {
    %c0_i32 = arith.constant 0 : i32
    %c0_i32_0 = arith.constant 0 : i32
    %c0_i32_1 = arith.constant 0 : i32
    return %c0_i32, %c0_i32_0 : i32, i32
  }
}

</mosaic_0001>

<bundles_post_ra>
// kernel: fwd.10
= control target key start
LH: loop header
LB: loop body
LE: loop exit
PB: predicated region body
PF: predicated region fallthrough
CT: control target
= control target key end

     0   :  { %vm18_vm0 = vcmask 261120   ;;  %vm70_vm1 = vcmask 257024   ;;  %s129_s0 = inlined_call_operand.vmem [shape: f32[16,32], index: 0, kind: input, shape index: {}]   ;;  %s130_s1 = inlined_call_operand.vmem [shape: f32[1,32], index: 1, kind: input, shape index: {}]   ;;  %s131_s2 = inlined_call_operand.vmem [shape: f32[1,32], index: 2, kind: input, shape index: {}]   ;;  %s132_s3 = inlined_call_operand.vmem [shape: bf16[16,32], index: 3, kind: output, shape index: {}]  }
   0x1   :  { %v14_v0 = vld [vmem:[%s129_s0] sm:$0xff]  ;;  %v15_v1 = vld [vmem:[%s129_s0 + $0x8] sm:$0xff] }
   0x2   :  { %v19_v2 = vsel %vm18_vm0, %v14_v0, 0.0  ;;  %v22_v3 = vsel %vm18_vm0, %v15_v1, 0.0  ;;  %v77_v21 = vld [vmem:[%s130_s1] ss:$0 sm:$0xff] }
   0x3   :  { %20 = vadd.xlane.f32.xlu0 %v19_v2  ;;  %v78_v23 = vld [vmem:[%s131_s2] ss:$0 sm:$0xff] }
   0x7   :  { %23 = vadd.xlane.f32.xlu0 %v22_v3 }
  0x90   :  { %v21_v4 = vpop.xlane.xlu0 %20 }
  0x91   :  { %v26_v5 = vmul.f32 0.03125, %v21_v4 }
  0x93   :  { %v28_v6 = vsub.f32 %v14_v0, %v26_v5 }
  0x94   :  { %v24_v7 = vpop.xlane.xlu0 %23 }
  0x95   :  { %v27_v8 = vmul.f32 0.03125, %v24_v7  ;;  %v30_v9 = vmul.f32 %v28_v6, %v28_v6 }
  0x97   :  { %v29_v10 = vsub.f32 %v15_v1, %v27_v8  ;;  %v32_v11 = vsel %vm18_vm0, %v30_v9, 0.0 }
  0x98   :  { %33 = vadd.xlane.f32.xlu1 %v32_v11 }
  0x99   :  { %v31_v12 = vmul.f32 %v29_v10, %v29_v10 }
  0x9b   :  { %v35_v13 = vsel %vm18_vm0, %v31_v12, 0.0 }
  0x9c   :  { %36 = vadd.xlane.f32.xlu1 %v35_v13 }
 0x125   :  { %v34_v14 = vpop.xlane.xlu1 %33 }
 0x126   :  { %v38_v15 = vmul.f32 0.03125, %v34_v14 }
 0x128   :  { %v40_v16 = vadd.f32 1e-12, %v38_v15 }
 0x129   :  { %v37_v17 = vpop.xlane.xlu1 %36 }
 0x12a   :  { %83 = vrsqrt.f32 %v40_v16  ;;  %v39_v18 = vmul.f32 0.03125, %v37_v17 }
 0x12c   :  { %v41_v19 = vadd.f32 1e-12, %v39_v18 }
 0x12e   :  { %85 = vrsqrt.f32 %v41_v19 }
 0x134   :  { %v84_v20 = vpop.eup %83 }
 0x135   :  { %v44_v22 = vmul.f32 %v84_v20, %v28_v6 }
 0x137   :  { %v52_v24 = vmul.f32 %v77_v21, %v44_v22 }
 0x138   :  { %v86_v25 = vpop.eup %85 }
 0x139   :  { %v60_v26 = vadd.f32 %v78_v23, %v52_v24  ;;  %v45_v27 = vmul.f32 %v86_v25, %v29_v10 }
 0x13b   :  { %v81_v28 = vpack.c.bf16 %v60_v26, %v60_v26  ;;  %v53_v29 = vmul.f32 %v77_v21, %v45_v27 }
 0x13d   :  { %71 = vst.msk [vmem:[%s132_s3] sm:$0xf] %vm70_vm1, %v81_v28  ;;  %v61_v30 = vadd.f32 %v78_v23, %v53_v29 }
 0x13f   :  { %v82_v31 = vpack.c.bf16 %v61_v30, %v61_v30 }
 0x141   :  { %72 = vst.msk [vmem:[%s132_s3 + $0x4] sm:$0xf] %vm70_vm1, %v82_v31 }

// kernel: fwd.11
= control target key start
LH: loop header
LB: loop body
LE: loop exit
PB: predicated region body
PF: predicated region fallthrough
CT: control target
= control target key end

     0   :  { %v130_v0 = vmov 0.0   ;;  %vm131_vm0 = vmmov 0   ;;  %vm45_vm1 = vcmask 261120   ;;  %vm98_vm2 = vcmask 781312   ;;  %s170_s1 = inlined_call_operand.vmem [shape: bf16[32,96], index: 1, kind: input, shape index: {}]   ;;  %s171_s0 = inlined_call_operand.vmem [shape: bf16[16,32], index: 0, kind: input, shape index: {}]   ;;  %s172_s2 = inlined_call_operand.vmem [shape: f32[1,96], index: 2, kind: input, shape index: {}]   ;;  %s173_s3 = inlined_call_operand.vmem [shape: bf16[16,96], index: 3, kind: output, shape index: {}]  }
   0x1   :  { %117 = vmatprep.subr.bf16.mxu0 %v130_v0  ;;  %v127_v1 = vld [vmem:[%s170_s1] sm:$0xff]   ;;  %121 = vmatprep.mubr.msk.bf16.mxu0 %vm131_vm0, %v130_v0  ;;  %v128_v2 = vld [vmem:[%s170_s1 + $0x8] sm:$0xff]  }
   0x2   :  { %118 = vmatpush3.bf16.msra.mxu0 %v127_v1  ;;  %v129_v3 = vld [vmem:[%s171_s0] sm:$0xff]  }
   0x3   :  { %119 = vmatprep.subr.bf16.mxu0 %v130_v0  ;;  %v105_v4 = vld [vmem:[%s172_s2] ss:$0 sm:$0xff] }
   0x6   :  { %120 = vmatpush3.bf16.msra.mxu0 %v128_v2 }
   0x9   :  { %122 = vmatmul.mubr.msk.bf16.vlgmr.msra.gmra.mrb[0].mxu0 %vm45_vm1, %v129_v3 }
  0xdc   :  { %v83_v5 = vpop.f32.mrb[0].mxu0 }
  0xdd   :  { %v84_v6 = vadd.f32 %v105_v4, %v83_v5  ;;  %v123_v7 = vpop.f32.mrb[1].mxu0 }
  0xde   :  { %v86_v8 = vpop.f32.mrb[2].mxu0 }
  0xdf   :  { %v112_v9 = vpack.c.bf16 %v84_v6, %v84_v6  ;;  %v87_v10 = vadd.f32 %v105_v4, %v86_v8  ;;  %v124_v11 = vpop.f32.mrb[3].mxu0 }
  0xe1   :  { %99 = vst.msk [vmem:[%s173_s3] sm:$0xf] %vm98_vm2, %v112_v9  ;;  %v113_v12 = vpack.c.bf16 %v87_v10, %v87_v10 }
  0xe3   :  { %100 = vst.msk [vmem:[%s173_s3 + $0x4] sm:$0xf] %vm98_vm2, %v113_v12 }

// kernel: fwd.12
= control target key start
LH: loop header
LB: loop body
LE: loop exit
PB: predicated region body
PF: predicated region fallthrough
CT: control target
= control target key end

     0   :  { %s704_s15 = smov 0   ;;  %s706_s16 = smov 0   ;;  %s773_s0 = inlined_call_operand.vmem [shape: bf16[2,2,8,16], index: 0, kind: input, shape index: {}]   ;;  %s774_s1 = inlined_call_operand.vmem [shape: bf16[2,2,8,16], index: 1, kind: input, shape index: {}]   ;;  %s775_s2 = inlined_call_operand.vmem [shape: bf16[2,2,8,16], index: 2, kind: input, shape index: {}]   ;;  %s776_s3 = inlined_call_operand.vmem [shape: f32[2,1,1,8], index: 3, kind: input, shape index: {}]   ;;  %s777_s4 = inlined_call_operand.vmem [shape: bf16[2,2,8,16], index: 4, kind: output, shape index: {}]  }
   0x1   :  { %s708_s17 = smov 0   ;;  %s710_s18 = smov 0  }
   0x2   :  { %s712_s19 = smov 0  }
   0x3 LB: > { %s23_s20 = sadd.s32 1, %s667_s17  ;;  %s26_s21 = sadd.s32 1, %s671_s18  ;;  %s675_s19 = sphi %s712_s19, %s14_s19   ;;  %s671_s18 = sphi %s710_s18, %s781_s18   ;;  %s667_s17 = sphi %s708_s17, %s780_s17   ;;  %s663_s16 = sphi %s706_s16, %s779_s16   ;;  %s659_s15 = sphi %s704_s15, %s778_s15  }
   0x4   : > { %p24_p0 = scmp.ge.s32.totalorder %s23_s20, 2  ;;  %p561_p1 = scmp.ge.s32.totalorder %s675_s19, 1 }
   0x5   : > { %p219_p2 = scmp.lt.s32.totalorder %s675_s19, 5 }
   0x6   : > { %s783_s20 = smov (%p24_p0, %s23_s20), 0  ;;  %s785_s21 = smov (!%p24_p0, %s26_s21), %s671_s18 }
   0x7   : > { %p220_p3 = pnand %p561_p1, %p219_p2  ;;  %p28_p4 = scmp.ge.s32.totalorder %s785_s21, 2 }
   0x8   : > { %p270_p5 = scmp.lt.s32.totalorder (!%p220_p3), %s663_s16, 1  ;;  %p272_p6 = scmp.lt.s32.totalorder (!%p220_p3), %s659_s15, 1  ;;  %v677_v0 = vmov (!%p220_p3), 0.0   ;;  %vm678_vm0 = vmmov (!%p220_p3), 0   ;;  %vm315_vm1 = vcmask (!%p220_p3), 130048   ;;  %vm362_vm2 = vcmask (!%p220_p3), 64512  }
   0x9   : > { %s787_s21 = smov (%p28_p4, %s785_s21), 0  ;;  %223 = sbr.rel (%p220_p3) target bundleno = 775 (0x307), region = 36 }
   0xa   : > { %579 = vmatprep.subr.bf16.mxu0 (!%p220_p3), %v677_v0  ;;  %581 = vmatprep.mubr.msk.bf16.mxu0 (!%p220_p3), %vm678_vm0, %v677_v0  ;;  %vm379_vm3 = vcmask (!%p220_p3), 1043456   ;;  %vm424_vm4 = vcmask (!%p220_p3), 125952  }
   0xb   : > { %585 = vmatprep.subr.bf16.mxu1 (!%p220_p3), %v677_v0  ;;  %587 = vmatprep.mubr.msk.bf16.mxu1 (!%p220_p3), %vm678_vm0, %v677_v0 }
  0x10   : > { %s789_s16 = smov (!%p270_p5, %s663_s16), 1  ;;  %s791_s15 = smov (!%p272_p6, %s659_s15), 1 }
  0x11   : > { %s562_s22 = sshll.u32 %s789_s16, 1  ;;  %s296_s7 = scalar_lea.vmem %s776_s3, %s789_s16 }
  0x12   : > { %s275_s23 = sadd.s32 %s562_s22, %s791_s15  ;;  %v570_v4 = vld [vmem:[%s296_s7] ss:$0 sm:$0xff] }
  0x13   : > { %s734_s24 = sshll.u32 %s275_s23, 2 }
  0x14   : > { %s285_s27 = scalar_lea.vmem %s774_s1, %s734_s24  ;;  %s277_s30 = scalar_lea.vmem %s773_s0, %s734_s24 }
  0x15   : > { %v307_v1 = vld [vmem:[%s285_s27] sm:$0xf]  ;;  %s293_s10 = scalar_lea.vmem %s775_s2, %s734_s24  ;;  %s304_s13 = scalar_lea.vmem %s777_s4, %s734_s24 }
  0x16   : > { %v320_v2 = vsel %vm315_vm1, %v307_v1, 0  ;;  %v306_v3 = vld [vmem:[%s277_s30] sm:$0xf] }
  0x17   : > { %580 = vmatpush3.bf16.xpose.msra.mxu0 %v320_v2  ;;  %v375_v16 = vld [vmem:[%s293_s10] sm:$0xf] }
  0x18   : > { %v381_v17 = vsel %vm379_vm3, %v375_v16, 0 }
  0x19   : > { %586 = vmatpush3.bf16.msra.mxu1 %v381_v17 }
  0x1e   : > { %582 = vmatmul.mubr.msk.bf16.vlgmr.msra.gmra.mrb[0].mxu0 %vm315_vm1, %v306_v3 }
  0xf1   : > { %v356_v5 = vpop.f32.mrb[0].mxu0 }
  0xf2   : > { %v357_v6 = vadd.f32 %v570_v4, %v356_v5  ;;  %v583_v7 = vpop.f32.mrb[1].mxu0 }
  0xf3   : > { %v359_v8 = vpop.f32.mrb[2].mxu0 }
  0xf4   : > { %v584_v9 = vpop.f32.mrb[3].mxu0  ;;  %v363_v10 = vsel %vm362_vm2, %v357_v6, -inf }
  0xf5   : > { %364 = vmax.xlane.f32.xlu0 %v363_v10 }
 0x182   : > { %v365_v11 = vpop.xlane.xlu0 %364 }
 0x183   : > { %v366_v12 = vsub.f32 %v357_v6, %v365_v11 }
 0x185   : > { %v367_v13 = vmul.f32 1.442695, %v366_v12 }
 0x187   : > { %633 = vpow2.f32 %v367_v13 }
 0x191   : > { %v634_v14 = vpop.eup %633 }
 0x192   : > { %v369_v15 = vsel %vm362_vm2, %v634_v14, 0.0 }
 0x193   : > { %370 = vadd.xlane.f32.xlu0 %v369_v15 }
 0x220   : > { %v371_v18 = vpop.xlane.xlu0 %370 }
 0x221   : > { %635 = vrcp.f32 %v371_v18 }
 0x22b   : > { %v636_v19 = vpop.eup %635 }
 0x22c   : > { %v373_v20 = vmul.f32 %v636_v19, %v634_v14 }
 0x22e   : > { %v374_v21 = vpack.c.bf16 %v373_v20, %v373_v20 }
 0x230   : > { %588 = vmatmul.mubr.msk.bf16.vlgmr.msra.gmra.mrb[0].mxu1 %vm362_vm2, %v374_v21 }
 0x303   : > { %v417_v22 = vpop.f32.mrb[0].mxu1 }
 0x304   : > { %v423_v23 = vpack.c.bf16 %v417_v22, %v417_v22  ;;  %v589_v24 = vpop.f32.mrb[1].mxu1 }
 0x305   : > { %v420_v25 = vpop.f32.mrb[2].mxu1 }
 0x306   : > { %425 = vst.msk [vmem:[%s304_s13] sm:$0xf] %vm424_vm4, %v423_v23  ;;  %v590_v26 = vpop.f32.mrb[3].mxu1 }
 0x307 PF: > { %s14_s19 = sadd.s32 1, %s675_s19   ;;  %s778_s15 = smov %s667_s17 }
 0x308   : > { %p11_p7 = scmp.ge.s32.totalorder %s14_s19, 6   ;;  %s779_s16 = smov %s671_s18 }
 0x309   : > { %s780_s17 = smov %s783_s20  ;;  %s781_s18 = smov %s787_s21 }
 0x30a   :  { %13 = sbr.rel (!%p11_p7) target bundleno = 3 (0x3), region = 75 }

// kernel: fwd.13
= control target key start
LH: loop header
LB: loop body
LE: loop exit
PB: predicated region body
PF: predicated region fallthrough
CT: control target
= control target key end

     0   :  { %v200_v0 = vmov 0.0   ;;  %vm201_vm0 = vmmov 0   ;;  %vm54_vm1 = vcmask 261120   ;;  %vm158_vm2 = vcmask 257024   ;;  %s269_s1 = inlined_call_operand.vmem [shape: bf16[32,32], index: 1, kind: input, shape index: {}]   ;;  %s270_s0 = inlined_call_operand.vmem [shape: bf16[16,32], index: 0, kind: input, shape index: {}]   ;;  %s271_s3 = inlined_call_operand.vmem [shape: bf16[16,32], index: 3, kind: input, shape index: {}]   ;;  %s272_s2 = inlined_call_operand.vmem [shape: f32[1,32], index: 2, kind: input, shape index: {}, may-alias: {2,5}]   ;;  %s273_s4 = inlined_call_operand.vmem [shape: f32[1,32], index: 4, kind: input, shape index: {}]   ;;  %s274_s5 = inlined_call_operand.vmem [shape: f32[1,32], index: 5, kind: input, shape index: {}, may-alias: {2,5}]   ;;  %s275_s6 = inlined_call_operand.vmem [shape: bf16[16,32], index: 6, kind: output, shape index: {}]  }
   0x1   :  { %183 = vmatprep.subr.bf16.mxu0 %v200_v0  ;;  %v193_v1 = vld [vmem:[%s269_s1] sm:$0xff]   ;;  %187 = vmatprep.mubr.msk.bf16.mxu0 %vm201_vm0, %v200_v0  ;;  %v194_v2 = vld [vmem:[%s269_s1 + $0x8] sm:$0xff]  }
   0x2   :  { %184 = vmatpush3.bf16.msra.mxu0 %v193_v1  ;;  %v195_v3 = vld [vmem:[%s270_s0] sm:$0xff]  }
   0x3   :  { %185 = vmatprep.subr.bf16.mxu0 %v200_v0  ;;  %v177_v4 = vld [vmem:[%s271_s3] sm:$0xff]  }
   0x4   :  { %v165_v5 = vld [vmem:[%s272_s2] ss:$0 sm:$0xff]  ;;  %v178_v6 = vunpack.c.l.bf16 %v177_v4  ;;  %v179_v10 = vunpack.c.h.bf16 %v177_v4 }
   0x5   :  { %v170_v35 = vld [vmem:[%s273_s4] ss:$0 sm:$0xff] }
   0x6   :  { %186 = vmatpush3.bf16.msra.mxu0 %v194_v2  ;;  %v171_v37 = vld [vmem:[%s274_s5] ss:$0 sm:$0xff] }
   0x9   :  { %188 = vmatmul.mubr.msk.bf16.vlgmr.msra.gmra.mrb[0].mxu0 %vm54_vm1, %v195_v3 }
  0xdc   :  { %v92_v7 = vpop.f32.mrb[0].mxu0 }
  0xdd   :  { %v93_v8 = vadd.f32 %v165_v5, %v92_v7  ;;  %v189_v9 = vpop.f32.mrb[1].mxu0 }
  0xde   :  { %v95_v11 = vpop.f32.mrb[2].mxu0 }
  0xdf   :  { %v96_v12 = vadd.f32 %v165_v5, %v95_v11  ;;  %v190_v13 = vpop.f32.mrb[3].mxu0  ;;  %v103_v14 = vadd.f32 %v178_v6, %v93_v8 }
  0xe1   :  { %v107_v15 = vsel %vm54_vm1, %v103_v14, 0.0  ;;  %v104_v16 = vadd.f32 %v179_v10, %v96_v12 }
  0xe2   :  { %108 = vadd.xlane.f32.xlu0 %v107_v15 }
  0xe3   :  { %v110_v17 = vsel %vm54_vm1, %v104_v16, 0.0 }
  0xe6   :  { %111 = vadd.xlane.f32.xlu0 %v110_v17 }
 0x16f   :  { %v109_v18 = vpop.xlane.xlu0 %108 }
 0x170   :  { %v114_v19 = vmul.f32 0.03125, %v109_v18 }
 0x172   :  { %v116_v20 = vsub.f32 %v103_v14, %v114_v19 }
 0x173   :  { %v112_v21 = vpop.xlane.xlu0 %111 }
 0x174   :  { %v115_v22 = vmul.f32 0.03125, %v112_v21  ;;  %v118_v23 = vmul.f32 %v116_v20, %v116_v20 }
 0x176   :  { %v117_v24 = vsub.f32 %v104_v16, %v115_v22  ;;  %v120_v25 = vsel %vm54_vm1, %v118_v23, 0.0 }
 0x177   :  { %121 = vadd.xlane.f32.xlu1 %v120_v25 }
 0x178   :  { %v119_v26 = vmul.f32 %v117_v24, %v117_v24 }
 0x17a   :  { %v123_v27 = vsel %vm54_vm1, %v119_v26, 0.0 }
 0x17b   :  { %124 = vadd.xlane.f32.xlu1 %v123_v27 }
 0x204   :  { %v122_v28 = vpop.xlane.xlu1 %121 }
 0x205   :  { %v126_v29 = vmul.f32 0.03125, %v122_v28 }
 0x207   :  { %v128_v30 = vadd.f32 1e-12, %v126_v29 }
 0x208   :  { %v125_v31 = vpop.xlane.xlu1 %124 }
 0x209   :  { %196 = vrsqrt.f32 %v128_v30  ;;  %v127_v32 = vmul.f32 0.03125, %v125_v31 }
 0x20b   :  { %v129_v33 = vadd.f32 1e-12, %v127_v32 }
 0x20d   :  { %198 = vrsqrt.f32 %v129_v33 }
 0x213   :  { %v197_v34 = vpop.eup %196 }
 0x214   :  { %v132_v36 = vmul.f32 %v197_v34, %v116_v20 }
 0x216   :  { %v140_v38 = vmul.f32 %v170_v35, %v132_v36 }
 0x217   :  { %v199_v39 = vpop.eup %198 }
 0x218   :  { %v148_v40 = vadd.f32 %v171_v37, %v140_v38  ;;  %v133_v41 = vmul.f32 %v199_v39, %v117_v24 }
 0x21a   :  { %v174_v42 = vpack.c.bf16 %v148_v40, %v148_v40  ;;  %v141_v43 = vmul.f32 %v170_v35, %v133_v41 }
 0x21c   :  { %159 = vst.msk [vmem:[%s275_s6] sm:$0xf] %vm158_vm2, %v174_v42  ;;  %v149_v44 = vadd.f32 %v171_v37, %v141_v43 }
 0x21e   :  { %v175_v45 = vpack.c.bf16 %v149_v44, %v149_v44 }
 0x220   :  { %160 = vst.msk [vmem:[%s275_s6 + $0x4] sm:$0xf] %vm158_vm2, %v175_v45 }

// kernel: fwd.14
= control target key start
LH: loop header
LB: loop body
LE: loop exit
PB: predicated region body
PF: predicated region fallthrough
CT: control target
= control target key end

     0   :  { %v332_v0 = vmov 0.0   ;;  %vm333_vm0 = vmmov 0   ;;  %vm57_vm1 = vcmask 261120   ;;  %vm160_vm2 = vcmask 523264   ;;  %s418_s1 = inlined_call_operand.vmem [shape: bf16[32,64], index: 1, kind: input, shape index: {}]   ;;  %s419_s0 = inlined_call_operand.vmem [shape: bf16[16,32], index: 0, kind: input, shape index: {}]   ;;  %s420_s3 = inlined_call_operand.vmem [shape: bf16[64,32], index: 3, kind: input, shape index: {}]   ;;  %s421_s2 = inlined_call_operand.vmem [shape: f32[1,64], index: 2, kind: input, shape index: {}]   ;;  %s422_s4 = inlined_call_operand.vmem [shape: f32[1,32], index: 4, kind: input, shape index: {}, may-alias: {4,6}]   ;;  %s423_s5 = inlined_call_operand.vmem [shape: f32[1,32], index: 5, kind: input, shape index: {}]   ;;  %s424_s6 = inlined_call_operand.vmem [shape: f32[1,32], index: 6, kind: input, shape index: {}, may-alias: {4,6}]   ;;  %s425_s7 = inlined_call_operand.vmem [shape: bf16[16,32], index: 7, kind: output, shape index: {}]  }
   0x1   :  { %294 = vmatprep.subr.bf16.mxu0 %v332_v0  ;;  %v316_v1 = vld [vmem:[%s418_s1] sm:$0xff]   ;;  %298 = vmatprep.mubr.msk.bf16.mxu0 %vm333_vm0, %v332_v0  ;;  %v317_v2 = vld [vmem:[%s418_s1 + $0x8] sm:$0xff]   ;;  %v321_v6 = vld [vmem:[%s420_s3 + $0x10] sm:$0xff]   ;;  %vm262_vm3 = vcmask 257024  }
   0x2   :  { %302 = vmatprep.subr.bf16.mxu1 %v332_v0  ;;  %310 = vmatprep.mubr.msk.bf16.mxu1 %vm333_vm0, %v332_v0  ;;  %v27_v3 = vld [vmem:[%s419_s0] sm:$0xff]   ;;  %v320_v5 = vld [vmem:[%s420_s3 + $0x8] sm:$0xff]   ;;  %v322_v7 = vld [vmem:[%s420_s3 + $0x18] sm:$0xff]  }
   0x3   :  { %295 = vmatpush3.bf16.msra.mxu0 %v316_v1  ;;  %v319_v4 = vld [vmem:[%s420_s3] sm:$0xff]   ;;  %v205_v35 = vunpack.c.l.bf16 %v27_v3  ;;  %v206_v39 = vunpack.c.h.bf16 %v27_v3 }
   0x4   :  { %296 = vmatprep.subr.bf16.mxu0 %v332_v0  ;;  %303 = vmatpush3.bf16.msra.mxu1 %v319_v4  ;;  %v269_v8 = vld [vmem:[%s421_s2] ss:$0 sm:$0xff] }
   0x5   :  { %304 = vmatprep.subr.bf16.mxu1 %v332_v0  ;;  %v274_v34 = vld [vmem:[%s422_s4] ss:$0 sm:$0xff] }
   0x7   :  { %297 = vmatpush3.bf16.msra.mxu0 %v317_v2  ;;  %v281_v2 = vld [vmem:[%s424_s6] ss:$0 sm:$0xff] }
   0x8   :  { %305 = vmatpush3.bf16.msra.mxu1 %v320_v5 }
   0x9   :  { %306 = vmatprep.subr.bf16.mxu1 %v332_v0 }
   0xa   :  { %299 = vmatmul.mubr.msk.bf16.vlgmr.msra.gmra.mrb[0].mxu0 %vm57_vm1, %v27_v3 }
   0xc   :  { %307 = vmatpush3.bf16.msra.mxu1 %v321_v6 }
   0xd   :  { %308 = vmatprep.subr.bf16.mxu1 %v332_v0  ;;  %v280_v0 = vld [vmem:[%s423_s5] ss:$0 sm:$0xff] }
  0x10   :  { %309 = vmatpush3.bf16.msra.mxu1 %v322_v7 }
  0xdd   :  { %v95_v9 = vpop.f32.mrb[0].mxu0 }
  0xde   :  { %v96_v10 = vadd.f32 %v269_v8, %v95_v9  ;;  %v300_v11 = vpop.f32.mrb[1].mxu0 }
  0xdf   :  { %v98_v12 = vpop.f32.mrb[2].mxu0 }
  0xe0   :  { %v104_v13 = vmul.f32 0.044715, %v96_v10  ;;  %v99_v14 = vadd.f32 %v269_v8, %v98_v12  ;;  %v301_v15 = vpop.f32.mrb[3].mxu0  ;;  %v102_v28 = vmul.f32 0.5, %v96_v10 }
  0xe2   :  { %v106_v16 = vmul.f32 %v104_v13, %v96_v10  ;;  %v105_v17 = vmul.f32 0.044715, %v99_v14  ;;  %v103_v29 = vmul.f32 0.5, %v99_v14 }
  0xe4   :  { %v108_v18 = vmul.f32 %v106_v16, %v96_v10  ;;  %v107_v19 = vmul.f32 %v105_v17, %v99_v14 }
  0xe6   :  { %v110_v20 = vadd.f32 %v108_v18, %v96_v10  ;;  %v109_v21 = vmul.f32 %v107_v19, %v99_v14 }
  0xe8   :  { %v112_v22 = vmul.f32 0.7978846, %v110_v20  ;;  %v111_v23 = vadd.f32 %v109_v21, %v99_v14 }
  0xea   :  { %324 = vtanh.f32 %v112_v22  ;;  %v113_v24 = vmul.f32 0.7978846, %v111_v23 }
  0xec   :  { %326 = vtanh.f32 %v113_v24 }
  0xf4   :  { %v325_v25 = vpop.eup %324 }
  0xf5   :  { %v116_v26 = vadd.f32 1.0, %v325_v25 }
  0xf6   :  { %v327_v27 = vpop.eup %326 }
  0xf7   :  { %v117_v30 = vadd.f32 1.0, %v327_v27  ;;  %v118_v31 = vmul.f32 %v116_v26, %v102_v28 }
  0xf9   :  { %v119_v32 = vmul.f32 %v117_v30, %v103_v29 }
  0xfb   :  { %v120_v33 = vpack.c.bf16 %v119_v32, %v118_v31 }
  0xfd   :  { %311 = vmatmul.mubr.msk.bf16.vlgmr.msra.gmra.mrb[0].mxu1 %vm160_vm2, %v120_v33 }
 0x1d0   :  { %v198_v36 = vpop.f32.mrb[0].mxu1 }
 0x1d1   :  { %v199_v37 = vadd.f32 %v274_v34, %v198_v36  ;;  %v312_v38 = vpop.f32.mrb[1].mxu1 }
 0x1d2   :  { %v201_v40 = vpop.f32.mrb[2].mxu1 }
 0x1d3   :  { %v202_v41 = vadd.f32 %v274_v34, %v201_v40  ;;  %v313_v42 = vpop.f32.mrb[3].mxu1  ;;  %v207_v43 = vadd.f32 %v205_v35, %v199_v37 }
 0x1d5   :  { %v211_v44 = vsel %vm57_vm1, %v207_v43, 0.0  ;;  %v208_v45 = vadd.f32 %v206_v39, %v202_v41 }
 0x1d6   :  { %212 = vadd.xlane.f32.xlu0 %v211_v44 }
 0x1d7   :  { %v214_v46 = vsel %vm57_vm1, %v208_v45, 0.0 }
 0x1da   :  { %215 = vadd.xlane.f32.xlu0 %v214_v46 }
 0x263   :  { %v213_v47 = vpop.xlane.xlu0 %212 }
 0x264   :  { %v218_v48 = vmul.f32 0.03125, %v213_v47 }
 0x266   :  { %v220_v49 = vsub.f32 %v207_v43, %v218_v48 }
 0x267   :  { %v216_v50 = vpop.xlane.xlu0 %215 }
 0x268   :  { %v219_v51 = vmul.f32 0.03125, %v216_v50  ;;  %v222_v52 = vmul.f32 %v220_v49, %v220_v49 }
 0x26a   :  { %v221_v53 = vsub.f32 %v208_v45, %v219_v51  ;;  %v224_v54 = vsel %vm57_vm1, %v222_v52, 0.0 }
 0x26b   :  { %225 = vadd.xlane.f32.xlu1 %v224_v54 }
 0x26c   :  { %v223_v55 = vmul.f32 %v221_v53, %v221_v53 }
 0x26e   :  { %v227_v56 = vsel %vm57_vm1, %v223_v55, 0.0 }
 0x26f   :  { %228 = vadd.xlane.f32.xlu1 %v227_v56 }
 0x2f8   :  { %v226_v57 = vpop.xlane.xlu1 %225 }
 0x2f9   :  { %v230_v58 = vmul.f32 0.03125, %v226_v57 }
 0x2fb   :  { %v232_v59 = vadd.f32 1e-12, %v230_v58 }
 0x2fc   :  { %v229_v60 = vpop.xlane.xlu1 %228 }
 0x2fd   :  { %328 = vrsqrt.f32 %v232_v59  ;;  %v231_v61 = vmul.f32 0.03125, %v229_v60 }
 0x2ff   :  { %v233_v62 = vadd.f32 1e-12, %v231_v61 }
 0x301   :  { %330 = vrsqrt.f32 %v233_v62 }
 0x307   :  { %v329_v63 = vpop.eup %328 }
 0x308   :  { %v236_v1 = vmul.f32 %v329_v63, %v220_v49 }
 0x30a   :  { %v244_v3 = vmul.f32 %v280_v0, %v236_v1 }
 0x30b   :  { %v331_v4 = vpop.eup %330 }
 0x30c   :  { %v252_v5 = vadd.f32 %v281_v2, %v244_v3  ;;  %v237_v6 = vmul.f32 %v331_v4, %v221_v53 }
 0x30e   :  { %v284_v7 = vpack.c.bf16 %v252_v5, %v252_v5  ;;  %v245_v8 = vmul.f32 %v280_v0, %v237_v6 }
 0x310   :  { %263 = vst.msk [vmem:[%s425_s7] sm:$0xf] %vm262_vm3, %v284_v7  ;;  %v253_v9 = vadd.f32 %v281_v2, %v245_v8 }
 0x312   :  { %v285_v10 = vpack.c.bf16 %v253_v9, %v253_v9 }
 0x314   :  { %264 = vst.msk [vmem:[%s425_s7 + $0x4] sm:$0xf] %vm262_vm3, %v285_v10 }

// kernel: fwd.19
= control target key start
LH: loop header
LB: loop body
LE: loop exit
PB: predicated region body
PF: predicated region fallthrough
CT: control target
= control target key end

     0   :  { %v286_v1 = vmov 0.0   ;;  %vm287_vm0 = vmmov 0   ;;  %s370_s0 = inlined_call_operand.vmem [shape: bf16[2,32], index: 0, kind: input, shape index: {}]   ;;  %s371_s1 = inlined_call_operand.vmem [shape: bf16[32,32], index: 1, kind: input, shape index: {}]   ;;  %s372_s2 = inlined_call_operand.vmem [shape: f32[1,32], index: 2, kind: input, shape index: {}, may-alias: {2,4}]   ;;  %s373_s3 = inlined_call_operand.vmem [shape: f32[1,32], index: 3, kind: input, shape index: {}]   ;;  %s374_s4 = inlined_call_operand.vmem [shape: f32[1,32], index: 4, kind: input, shape index: {}, may-alias: {2,4}]   ;;  %s375_s5 = inlined_call_operand.vmem [shape: bf16[32,4], index: 5, kind: input, shape index: {}]   ;;  %s376_s6 = inlined_call_operand.vmem [shape: f32[1,4], index: 6, kind: input, shape index: {}]   ;;  %s377_s7 = inlined_call_operand.hbm [shape: f32[2,4], index: 7, kind: output, shape index: {}]  }
   0x1   :  { %v254_v0 = vld [vmem:[%s371_s1] sm:$0xff]   ;;  %235 = vmatprep.subr.bf16.mxu0 %v286_v1  ;;  %243 = vmatprep.subr.bf16.mxu1 %v286_v1  ;;  %v255_v2 = vld [vmem:[%s371_s1 + $0x8] sm:$0xff]  }
   0x2   :  { %236 = vmatpush3.bf16.msra.mxu0 %v254_v0  ;;  %239 = vmatprep.mubr.msk.bf16.mxu0 %vm287_vm0, %v286_v1 }
   0x3   :  { %237 = vmatprep.subr.bf16.mxu0 %v286_v1  ;;  %247 = vmatprep.mubr.msk.bf16.mxu1 %vm287_vm0, %v286_v1 }
   0x4   :  { %12 = vsyncpa [#allocation3], 0  ;;  %v28_v3 = vld [vmem:[%s370_s0] sm:$0x1]  ;;  %vm52_vm1 = vcmask 261120   ;;  %vm107_vm2 = vcmask 254976  }
   0x5   :  { %v219_v4 = vld [vmem:[%s372_s2] ss:$0 sm:$0xff]  ;;  %v257_v26 = vld [vmem:[%s375_s5 + $0x8] sm:$0xff]   ;;  %s288_s15 = smov [#allocation2]   ;;  %vm203_vm3 = vcmask 25600  }
   0x6   :  { %238 = vmatpush3.bf16.msra.mxu0 %v255_v2  ;;  %v256_v25 = vld [vmem:[%s375_s5] sm:$0xff]   ;;  %s211_s16 = sshll.u32 %s288_s15, 4  ;;  %s212_s16 = int_to_ptr.vmem [resolvable:$true] %s211_s16 }
   0x7   :  { %244 = vmatpush3.bf16.msra.mxu1 %v256_v25  ;;  %v223_v31 = vld [vmem:[%s373_s3] ss:$0 sm:$0xff]  ;;  %s262_s3 = scalar_lea.vmem %s212_s16, 32  ;;  %p267_p1 = scmp.lt.s32.totalorder %s212_s16, %s212_s16 }
   0x8   :  { %245 = vmatprep.subr.bf16.mxu1 %v286_v1  ;;  %v224_v33 = vld [vmem:[%s374_s4] ss:$0 sm:$0xff]  ;;  %p263_p0 = scmp.ne.s32.totalorder %s212_s16, %s262_s3  ;;  %p268_p2 = scmp.lt.s32.totalorder %s262_s3, %s262_s3 }
   0x9   :  { %240 = vmatmul.mubr.msk.bf16.vlgmr.msra.gmra.mrb[0].mxu0 %vm52_vm1, %v28_v3  ;;  %v225_v37 = vld [vmem:[%s376_s6] ss:$0 sm:$0xff] }
   0xa   :  { %p269_p3 = por %p268_p2, %p267_p1 }
   0xb   :  { %246 = vmatpush3.bf16.msra.mxu1 %v257_v26 }
   0xc   :  { %p270_p4 = pnand %p269_p3, %p263_p0 }
  0xdc   :  { %v90_v5 = vpop.f32.mrb[0].mxu0 }
  0xdd   :  { %v91_v6 = vadd.f32 %v219_v4, %v90_v5  ;;  %v241_v7 = vpop.f32.mrb[1].mxu0 }
  0xde   :  { %v93_v8 = vpop.f32.mrb[2].mxu0 }
  0xdf   :  { %v97_v9 = vmul.f32 0.044715, %v91_v6  ;;  %v242_v10 = vpop.f32.mrb[3].mxu0  ;;  %v96_v16 = vmul.f32 0.5, %v91_v6 }
  0xe1   :  { %v98_v11 = vmul.f32 %v97_v9, %v91_v6 }
  0xe3   :  { %v99_v12 = vmul.f32 %v98_v11, %v91_v6 }
  0xe5   :  { %v100_v13 = vadd.f32 %v99_v12, %v91_v6 }
  0xe7   :  { %v101_v14 = vmul.f32 0.7978846, %v100_v13 }
  0xe9   :  { %258 = vtanh.f32 %v101_v14 }
  0xf3   :  { %v259_v15 = vpop.eup %258 }
  0xf4   :  { %v103_v17 = vadd.f32 1.0, %v259_v15 }
  0xf6   :  { %v104_v18 = vmul.f32 %v103_v17, %v96_v16 }
  0xf8   :  { %v108_v19 = vsel %vm107_vm2, %v104_v18, 0.0 }
  0xf9   :  { %109 = vadd.xlane.f32.xlu0 %v108_v19 }
 0x186   :  { %v110_v20 = vpop.xlane.xlu0 %109 }
 0x187   :  { %v112_v21 = vmul.f32 0.03125, %v110_v20 }
 0x189   :  { %v113_v22 = vsub.f32 %v104_v18, %v112_v21 }
 0x18b   :  { %v114_v23 = vmul.f32 %v113_v22, %v113_v22 }
 0x18d   :  { %v115_v24 = vsel %vm107_vm2, %v114_v23, 0.0 }
 0x18e   :  { %116 = vadd.xlane.f32.xlu0 %v115_v24 }
 0x21b   :  { %v117_v27 = vpop.xlane.xlu0 %116 }
 0x21c   :  { %v118_v28 = vmul.f32 0.03125, %v117_v27 }
 0x21e   :  { %v119_v29 = vadd.f32 1e-12, %v118_v28 }
 0x220   :  { %260 = vrsqrt.f32 %v119_v29 }
 0x22a   :  { %v261_v30 = vpop.eup %260 }
 0x22b   :  { %v121_v32 = vmul.f32 %v261_v30, %v113_v22 }
 0x22d   :  { %v128_v34 = vmul.f32 %v223_v31, %v121_v32 }
 0x22f   :  { %v135_v35 = vadd.f32 %v224_v33, %v128_v34 }
 0x231   :  { %v136_v36 = vpack.c.bf16 %v135_v35, %v135_v35 }
 0x233   :  { %248 = vmatmul.mubr.msk.bf16.vlgmr.msra.gmra.mrb[0].mxu1 %vm52_vm1, %v136_v36 }
 0x306   :  { %v197_v38 = vpop.f32.mrb[0].mxu1 }
 0x307   :  { %v198_v39 = vadd.f32 %v225_v37, %v197_v38  ;;  %v249_v40 = vpop.f32.mrb[1].mxu1 }
 0x308   :  { %v200_v41 = vpop.f32.mrb[2].mxu1 }
 0x309   :  { %v250_v42 = vpop.f32.mrb[3].mxu1  ;;  %204 = vst.msk [vmem:[#allocation2] sm:$0x3] %vm203_vm3, %v198_v39 }
 0x30a   :  { %273 = shalt.err (!%p270_p4)
}
 0x30b   :  { %s274_s6 = scalar_lea.hbm %s377_s7, 32 }
 0x30c   :  { %p275_p5 = scmp.ne.s32.totalorder %s377_s7, %s274_s6  ;;  %p278_p6 = scmp.lt.u32.totalorder %s274_s6, %s377_s7 }
 0x30e   :  { %p280_p7 = pnand %p278_p6, %p275_p5 }
 0x310   :  { %283 = shalt.err (!%p280_p7)
}
 0x311   :  { %214 = dma.vmem_to_hbm [thread:$0]  %s212_s16, 32, %s377_s7, [#allocation3]  }
 0x312   :  { %284 = dma.done.wait [#allocation3], 32  }
 0x313   :  { %285 = vsyncadd [#allocation3], 4294967264 }
 0x314   :  { %218 = vsyncpa [#allocation3], 1 }

</bundles_post_ra>
